<compile_context>
chip_gen: v7x
topology: tpu7x:2x2x1
jax: 0.10.0
libtpu: 0.0.40
codegen_flags: <defaults>
</compile_context>

<pallas_src>
import jax
import jax.numpy as jnp
from jax.experimental import pallas as pl
from jax.experimental.pallas import tpu as pltpu


def _round_up(x, m):
    return ((x + m - 1) // m) * m


def _compute_tag_column(h_ref, w_ref, b_ref):
    # h_ref: (TILE_N, H) bf16/f32, w_ref: (H, L) f32, b_ref: (1, L) f32
    x = h_ref[...].astype(jnp.float32)              # bf16 HBM stream -> f32 compute
    logits = jnp.dot(x, w_ref[...],
                     precision=jax.lax.Precision.HIGHEST,
                     preferred_element_type=jnp.float32) + b_ref[...]
    n, num_labels = logits.shape
    # argmax over the label (lane) axis, first occurrence on ties
    max_val = jnp.max(logits, axis=-1, keepdims=True)
    lane_idx = jax.lax.broadcasted_iota(jnp.int32, (n, num_labels), 1)
    candidates = jnp.where(logits == max_val, lane_idx, num_labels)
    return jnp.min(candidates, axis=-1, keepdims=True)     # (TILE_N, 1) int32


def seqmodel_tag_kernel_lane_dense(h_ref, w_ref, b_ref, tag_ref):
    # tag_ref: (1, TILE_N//128, 128) int32 -- lane-dense output block (unmasked vst)
    tag_col = _compute_tag_column(h_ref, w_ref, b_ref)
    # sublane -> lane relayout so stores use all 128 lanes
    tag_ref[...] = tag_col.reshape(tag_ref.shape)


def seqmodel_tag_kernel_column(h_ref, w_ref, b_ref, tag_ref):
    # Fallback layout: (TILE_N, 1) column output; only used if the sublane->lane
    # reshape above fails to lower on the installed Mosaic version.
    tag_ref[...] = _compute_tag_column(h_ref, w_ref, b_ref)


def _choose_tile_n(n, h, itemsize):
    n128 = _round_up(max(n, 1), 128)
    # ~4 MiB per hidden tile buffer (x2 for double buffering); multiple of 128 rows
    target_rows = (4 * 1024 * 1024) // max(1, h * itemsize)
    tile = max(128, min(8192, (target_rows // 128) * 128))
    # keep >= ~4 grid blocks when N is large (v7x: 2 TCs + per-TC double buffering)
    if n128 >= 4 * 128:
        tile = min(tile, _round_up((n128 + 3) // 4, 128))
    return min(tile, n128)


def seqmodel_forward_pallas(hidden, weight, bias, mask, *, tile_n=None):
    """hidden: (B, S, H) bf16/f32; weight: (H, L) f32 (transposed vs torch (L, H));
    bias: (L,) f32; mask: (B, S) bool/int.  Returns tag_seq: (B, S) int32."""
    B, S, H = hidden.shape
    L = weight.shape[1]
    N = B * S

    x = hidden.reshape(N, H)                    # keep upstream dtype (bf16 fast path)
    w = weight.astype(jnp.float32)              # keep weight in f32 (tiny stream)
    b = bias.reshape(1, L).astype(jnp.float32)

    itemsize = jnp.dtype(x.dtype).itemsize
    if tile_n is None:
        tile_n = _choose_tile_n(N, H, itemsize)
    else:
        tile_n = max(128, _round_up(int(tile_n), 128))
        tile_n = min(tile_n, _round_up(N, 128))
    n_pad = _round_up(N, tile_n)
    if n_pad != N:
        x = jnp.pad(x, ((0, n_pad - N), (0, 0)))    # padded rows sliced off below

    num_tiles = n_pad // tile_n
    tile_rows = tile_n // 128

    # explicit VMEM budget: double-buffered hidden + tag tiles + resident weight/bias
    vmem_needed = (2 * (tile_n * H * itemsize + tile_n * 4)
                   + 2 * (H * L * 4 + L * 4) + (2 << 20))
    vmem_limit = int(min(max(vmem_needed, 16 << 20), 64 << 20))

    cost = pl.CostEstimate(
        flops=2 * n_pad * H * L,
        transcendentals=0,
        bytes_accessed=(n_pad * H * itemsize       # hidden stream (dominant)
                        + H * L * 4 + L * 4        # weight + bias
                        + n_pad * 4),              # tags out
    )

    def run(kernel, out_shape, out_spec):
        return pl.pallas_call(
            kernel,
            out_shape=out_shape,
            grid=(num_tiles,),
            in_specs=[
                pl.BlockSpec((tile_n, H), lambda i: (i, 0)),   # hidden rows (tiled)
                pl.BlockSpec((H, L), lambda i: (0, 0)),        # weight (resident)
                pl.BlockSpec((1, L), lambda i: (0, 0)),        # bias   (resident)
            ],
            out_specs=out_spec,
            compiler_params=pltpu.CompilerParams(
                dimension_semantics=("parallel",),             # shard rows across TCs
                vmem_limit_bytes=vmem_limit),
            cost_estimate=cost,
        )(x, w, b)

    try:
        tag_tiles = run(
            seqmodel_tag_kernel_lane_dense,
            jax.ShapeDtypeStruct((num_tiles, tile_rows, 128), jnp.int32),
            pl.BlockSpec((1, tile_rows, 128), lambda i: (i, 0, 0)))
        tag_flat = tag_tiles.reshape(n_pad)[:N]
    except Exception:
        # Lowering safety net only: lane-sparse column output (v1 layout).
        tag_col = run(
            seqmodel_tag_kernel_column,
            jax.ShapeDtypeStruct((n_pad, 1), jnp.int32),
            pl.BlockSpec((tile_n, 1), lambda i: (i, 0)))
        tag_flat = tag_col[:N, 0]

    # mask.long() * tag_seq, applied in the wrapper (no mask DMA stream in-kernel)
    return tag_flat.reshape(B, S) * mask.astype(jnp.int32)


def reference_forward(hidden, weight, bias, mask):
    logits = jnp.einsum("bsh,hl->bsl", hidden.astype(jnp.float32),
                        weight.astype(jnp.float32),
                        precision=jax.lax.Precision.HIGHEST,
                        preferred_element_type=jnp.float32)
    logits = logits + bias.astype(jnp.float32)
    tag = jnp.argmax(logits, axis=-1).astype(jnp.int32)
    return tag * mask.astype(jnp.int32)


def seqmodel_forward(hidden, weight, bias, mask, *, tile_n=None,
                     force_pallas=False, small_n_threshold=4096):
    B, S, _ = hidden.shape
    if not force_pallas and B * S < small_n_threshold:
        # At shipped SeqModel sizes the whole input is < one tile; fixed launch +
        # pipeline-prime overhead dominates, so use the fused XLA path instead.
        return reference_forward(hidden, weight, bias, mask)
    return seqmodel_forward_pallas(hidden, weight, bias, mask, tile_n=tile_n)


if __name__ == "__main__":
    # Small shapes consistent with SeqModel: batch=2, seq=8, HP_hidden_dim=32,
    # source_label_alphabet_size=12 (use_crf_sl=False, so no +2).
    B, S, H, L = 2, 8, 32, 12

    key = jax.random.PRNGKey(0)
    k_hid, k_w, k_b, k_hid2 = jax.random.split(key, 4)

    # Surrogate for WordSequence output (external module) -- emitted in bf16.
    hidden = jax.random.normal(k_hid, (B, S, H), dtype=jnp.float32).astype(jnp.bfloat16)

    # Deterministic init of source_hidden2tag (nn.Linear(H, L)) parameters.
    bound = 1.0 / (H ** 0.5)
    weight = jax.random.uniform(k_w, (H, L), minval=-bound, maxval=bound,
                                dtype=jnp.float32)
    bias = jax.random.uniform(k_b, (L,), minval=-bound, maxval=bound,
                              dtype=jnp.float32)

    # Mask: variable-length sequences (batch 0 has 8 valid tokens, batch 1 has 5).
    lengths = jnp.array([8, 5], dtype=jnp.int32)
    mask = (jnp.arange(S)[None, :] < lengths[:, None])

    tag_seq = jax.block_until_ready(
        seqmodel_forward(hidden, weight, bias, mask, force_pallas=True))
    expected = reference_forward(hidden, weight, bias, mask)
    assert tag_seq.shape == (B, S)
    assert bool(jnp.all(tag_seq == expected))

    # Small-N auto-dispatch (plain-JAX fallback) must agree as well.
    tag_seq_fb = jax.block_until_ready(seqmodel_forward(hidden, weight, bias, mask))
    assert bool(jnp.all(tag_seq_fb == expected))

    # Second check: multi-tile grid (forced tile_n=128), tail-row padding, and the
    # lane-dense output slice-back.
    B2, S2 = 3, 100
    hidden2 = jax.random.normal(k_hid2, (B2, S2, H),
                                dtype=jnp.float32).astype(jnp.bfloat16)
    lengths2 = jnp.array([100, 57, 3], dtype=jnp.int32)
    mask2 = (jnp.arange(S2)[None, :] < lengths2[:, None])

    tag_seq2 = jax.block_until_ready(
        seqmodel_forward(hidden2, weight, bias, mask2, tile_n=128, force_pallas=True))
    expected2 = reference_forward(hidden2, weight, bias, mask2)
    assert tag_seq2.shape == (B2, S2)
    assert bool(jnp.all(tag_seq2 == expected2))

    print("KERNEL_OK")
</pallas_src>

<mosaic_0001>
module attributes {stable_mosaic.version = 11 : i64} {
  func.func @seqmodel_tag_kernel_lane_dense(%arg0: i32, %arg1: memref<128x32xbf16, #tpu.memory_space<vmem>>, %arg2: memref<32x12xf32, #tpu.memory_space<vmem>>, %arg3: memref<1x12xf32, #tpu.memory_space<vmem>>, %arg4: memref<1x1x128xi32, #tpu.memory_space<vmem>>) attributes {dimension_semantics = [#tpu.dimension_semantics<parallel>], iteration_bounds = array<i64: 1>, scalar_prefetch = 0 : i64, scratch_operands = 0 : i64, tpu.core_type = #tpu.core_type<tc>, window_params = [{transform_indices = @transform_0, window_bounds = array<i64: 128, 32>}, {pipeline_mode = #tpu.pipeline_mode<synchronous>, transform_indices = @transform_1, window_bounds = array<i64: 32, 12>}, {pipeline_mode = #tpu.pipeline_mode<synchronous>, transform_indices = @transform_2, window_bounds = array<i64: 1, 12>}, {transform_indices = @transform_3, window_bounds = array<i64: 1, 1, 128>}]} {
    %c0 = arith.constant 0 : index
    %c0_0 = arith.constant 0 : index
    %0 = vector.load %arg1[%c0, %c0_0] : memref<128x32xbf16, #tpu.memory_space<vmem>>, vector<128x32xbf16>
    %1 = arith.extf %0 : vector<128x32xbf16> to vector<128x32xf32>
    %c0_1 = arith.constant 0 : index
    %c0_2 = arith.constant 0 : index
    %2 = vector.load %arg2[%c0_1, %c0_2] : memref<32x12xf32, #tpu.memory_space<vmem>>, vector<32x12xf32>
    %cst = arith.constant dense<0.000000e+00> : vector<128x12xf32>
    %3 = tpu.matmul %1, %2, %cst {dimension_numbers = #tpu.dot_dimension_numbers<[1], [0], [0], [1], [0, 0, 1, 1], [], []>, precision = #tpu.contract_precision<fp32>} : vector<128x32xf32>, vector<32x12xf32>, vector<128x12xf32> -> vector<128x12xf32>
    %c0_3 = arith.constant 0 : index
    %c0_4 = arith.constant 0 : index
    %4 = vector.load %arg3[%c0_3, %c0_4] : memref<1x12xf32, #tpu.memory_space<vmem>>, vector<1x12xf32>
    %5 = vector.broadcast %4 : vector<1x12xf32> to vector<128x12xf32>
    %6 = arith.addf %3, %5 : vector<128x12xf32>
    %cst_5 = arith.constant dense<0xFF800000> : vector<128xf32>
    %7 = vector.multi_reduction <maximumf>, %6, %cst_5 [1] : vector<128x12xf32> to vector<128xf32>
    %8 = vector.shape_cast %7 : vector<128xf32> to vector<128x1xf32>
    %9 = tpu.iota {dimensions = array<i32: 1>} : vector<128x12xi32>
    %10 = vector.broadcast %8 : vector<128x1xf32> to vector<128x12xf32>
    %11 = arith.cmpf oeq, %6, %10 : vector<128x12xf32>
    %c12_i32 = arith.constant 12 : i32
    %12 = vector.broadcast %c12_i32 : i32 to vector<128x12xi32>
    %13 = arith.select %11, %9, %12 : vector<128x12xi1>, vector<128x12xi32>
    %cst_6 = arith.constant dense<2147483647> : vector<128xi32>
    %14 = vector.multi_reduction <minsi>, %13, %cst_6 [1] : vector<128x12xi32> to vector<128xi32>
    %15 = vector.shape_cast %14 : vector<128xi32> to vector<128x1xi32>
    %16 = vector.shape_cast %15 : vector<128x1xi32> to vector<1x1x128xi32>
    %c0_7 = arith.constant 0 : index
    %c0_8 = arith.constant 0 : index
    %c0_9 = arith.constant 0 : index
    %17 = vector.load %arg4[%c0_7, %c0_8, %c0_9] : memref<1x1x128xi32, #tpu.memory_space<vmem>>, vector<1x1x128xi32>
    tpu.vector_store %arg4[%c0_7, %c0_8, %c0_9], %16 {strides = array<i32>} : memref<1x1x128xi32, #tpu.memory_space<vmem>>, vector<1x1x128xi32>,
    return
  }
  func.func @transform_0(%arg0: i32) -> (i32, i32) {
    %c0_i32 = arith.constant 0 : i32
    %c0_i32_0 = arith.constant 0 : i32
    return %arg0, %c0_i32 : i32, i32
  }
  func.func @transform_1(%arg0: i32) -> (i32, i32) {
    %c0_i32 = arith.constant 0 : i32
    %c0_i32_0 = arith.constant 0 : i32
    %c0_i32_1 = arith.constant 0 : i32
    return %c0_i32, %c0_i32_0 : i32, i32
  }
  func.func @transform_2(%arg0: i32) -> (i32, i32) {
    %c0_i32 = arith.constant 0 : i32
    %c0_i32_0 = arith.constant 0 : i32
    %c0_i32_1 = arith.constant 0 : i32
    return %c0_i32, %c0_i32_0 : i32, i32
  }
  func.func @transform_3(%arg0: i32) -> (i32, i32, i32) {
    %c0_i32 = arith.constant 0 : i32
    %c0_i32_0 = arith.constant 0 : i32
    %c0_i32_1 = arith.constant 0 : i32
    return %arg0, %c0_i32, %c0_i32_0 : i32, i32, i32
  }
}

module attributes {stable_mosaic.version = 11 : i64} {
  func.func @seqmodel_tag_kernel_column(%arg0: i32, %arg1: memref<128x32xbf16, #tpu.memory_space<vmem>>, %arg2: memref<32x12xf32, #tpu.memory_space<vmem>>, %arg3: memref<1x12xf32, #tpu.memory_space<vmem>>, %arg4: memref<128x1xi32, #tpu.memory_space<vmem>>) attributes {dimension_semantics = [#tpu.dimension_semantics<parallel>], iteration_bounds = array<i64: 1>, scalar_prefetch = 0 : i64, scratch_operands = 0 : i64, tpu.core_type = #tpu.core_type<tc>, window_params = [{transform_indices = @transform_0, window_bounds = array<i64: 128, 32>}, {pipeline_mode = #tpu.pipeline_mode<synchronous>, transform_indices = @transform_1, window_bounds = array<i64: 32, 12>}, {pipeline_mode = #tpu.pipeline_mode<synchronous>, transform_indices = @transform_2, window_bounds = array<i64: 1, 12>}, {transform_indices = @transform_3, window_bounds = array<i64: 128, 1>}]} {
    %c0 = arith.constant 0 : index
    %c0_0 = arith.constant 0 : index
    %0 = vector.load %arg1[%c0, %c0_0] : memref<128x32xbf16, #tpu.memory_space<vmem>>, vector<128x32xbf16>
    %1 = arith.extf %0 : vector<128x32xbf16> to vector<128x32xf32>
    %c0_1 = arith.constant 0 : index
    %c0_2 = arith.constant 0 : index
    %2 = vector.load %arg2[%c0_1, %c0_2] : memref<32x12xf32, #tpu.memory_space<vmem>>, vector<32x12xf32>
    %cst = arith.constant dense<0.000000e+00> : vector<128x12xf32>
    %3 = tpu.matmul %1, %2, %cst {dimension_numbers = #tpu.dot_dimension_numbers<[1], [0], [0], [1], [0, 0, 1, 1], [], []>, precision = #tpu.contract_precision<fp32>} : vector<128x32xf32>, vector<32x12xf32>, vector<128x12xf32> -> vector<128x12xf32>
    %c0_3 = arith.constant 0 : index
    %c0_4 = arith.constant 0 : index
    %4 = vector.load %arg3[%c0_3, %c0_4] : memref<1x12xf32, #tpu.memory_space<vmem>>, vector<1x12xf32>
    %5 = vector.broadcast %4 : vector<1x12xf32> to vector<128x12xf32>
    %6 = arith.addf %3, %5 : vector<128x12xf32>
    %cst_5 = arith.constant dense<0xFF800000> : vector<128xf32>
    %7 = vector.multi_reduction <maximumf>, %6, %cst_5 [1] : vector<128x12xf32> to vector<128xf32>
    %8 = vector.shape_cast %7 : vector<128xf32> to vector<128x1xf32>
    %9 = tpu.iota {dimensions = array<i32: 1>} : vector<128x12xi32>
    %10 = vector.broadcast %8 : vector<128x1xf32> to vector<128x12xf32>
    %11 = arith.cmpf oeq, %6, %10 : vector<128x12xf32>
    %c12_i32 = arith.constant 12 : i32
    %12 = vector.broadcast %c12_i32 : i32 to vector<128x12xi32>
    %13 = arith.select %11, %9, %12 : vector<128x12xi1>, vector<128x12xi32>
    %cst_6 = arith.constant dense<2147483647> : vector<128xi32>
    %14 = vector.multi_reduction <minsi>, %13, %cst_6 [1] : vector<128x12xi32> to vector<128xi32>
    %15 = vector.shape_cast %14 : vector<128xi32> to vector<128x1xi32>
    %c0_7 = arith.constant 0 : index
    %c0_8 = arith.constant 0 : index
    %16 = vector.load %arg4[%c0_7, %c0_8] : memref<128x1xi32, #tpu.memory_space<vmem>>, vector<128x1xi32>
    tpu.vector_store %arg4[%c0_7, %c0_8], %15 {strides = array<i32>} : memref<128x1xi32, #tpu.memory_space<vmem>>, vector<128x1xi32>,
    return
  }
  func.func @transform_0(%arg0: i32) -> (i32, i32) {
    %c0_i32 = arith.constant 0 : i32
    %c0_i32_0 = arith.constant 0 : i32
    return %arg0, %c0_i32 : i32, i32
  }
  func.func @transform_1(%arg0: i32) -> (i32, i32) {
    %c0_i32 = arith.constant 0 : i32
    %c0_i32_0 = arith.constant 0 : i32
    %c0_i32_1 = arith.constant 0 : i32
    return %c0_i32, %c0_i32_0 : i32, i32
  }
  func.func @transform_2(%arg0: i32) -> (i32, i32) {
    %c0_i32 = arith.constant 0 : i32
    %c0_i32_0 = arith.constant 0 : i32
    %c0_i32_1 = arith.constant 0 : i32
    return %c0_i32, %c0_i32_0 : i32, i32
  }
  func.func @transform_3(%arg0: i32) -> (i32, i32) {
    %c0_i32 = arith.constant 0 : i32
    %c0_i32_0 = arith.constant 0 : i32
    return %arg0, %c0_i32 : i32, i32
  }
}

</mosaic_0001>

<bundles_post_ra>
// kernel: tpu_custom_call.1
= control target key start
LH: loop header
LB: loop body
LE: loop exit
PB: predicated region body
PF: predicated region fallthrough
CT: control target
= control target key end

     0   :  { %vm58_vm0 = vcmask 261120   ;;  %s2990_s0 = inlined_call_operand.vmem [shape: bf16[128,32], index: 0, kind: input, shape index: {}]   ;;  %s2991_s1 = inlined_call_operand.vmem [shape: f32[32,12], index: 1, kind: input, shape index: {}]   ;;  %s2992_s2 = inlined_call_operand.vmem [shape: f32[1,12], index: 2, kind: input, shape index: {}]   ;;  %s2993_s3 = inlined_call_operand.hbm [shape: s32[1,1,128], index: 3, kind: output, shape index: {}]  }
   0x1   :  { %v47_v0 = vld [vmem:[%s2991_s1] sm:$0xff]  ;;  %v48_v1 = vld [vmem:[%s2991_s1 + $0x8] sm:$0xff]  ;;  %v2283_v2 = vld [vmem:[%s2991_s1 + $0x10] sm:$0xff] }
   0x2   :  { %v108_v3 = vand.u32 4294901760, %v47_v0  ;;  %v111_v4 = vand.u32 4294901760, %v48_v1  ;;  %v2288_v5 = vld [vmem:[%s2991_s1 + $0x18] sm:$0xff]  ;;  %v114_v6 = vand.u32 4294901760, %v2283_v2  ;;  %v1734_v7 = vld [vmem:[%s2990_s0] sm:$0xff]   ;;  %v1765_v8 = vld [vmem:[%s2990_s0 + $0x8] sm:$0xff]  }
   0x3   :  { %v117_v9 = vand.u32 4294901760, %v2288_v5  ;;  %v2298_v10 = vunpack.c.l.bf16 %v1734_v7  ;;  %v2300_v11 = vunpack.c.h.bf16 %v1734_v7  ;;  %v2302_v12 = vunpack.c.l.bf16 %v1765_v8  ;;  %v1766_v17 = vld [vmem:[%s2990_s0 + $0x10] sm:$0xff]  }
   0x4   :  { %v2304_v13 = vpack.c.bf16 %v111_v4, %v108_v3  ;;  %v2306_v14 = vsub.f32 %v47_v0, %v108_v3  ;;  %v2308_v15 = vsub.f32 %v48_v1, %v111_v4  ;;  %v2310_v16 = vunpack.c.h.bf16 %v1765_v8 }
   0x5   :  { %v2319_v18 = vpack.c.bf16 %v117_v9, %v114_v6  ;;  %v60_v19 = vsel %vm58_vm0, %v2298_v10, 0  ;;  %v63_v20 = vsel %vm58_vm0, %v2300_v11, 0  ;;  %v66_v21 = vsel %vm58_vm0, %v2302_v12, 0 }
   0x6   :  { %2085 = vmatprep.subr.bf16.mxu1 %v2304_v13  ;;  %2109 = vmatprep.subr.bf16.mxu0 %v2304_v13  ;;  %v2329_v22 = vsub.f32 %v60_v19, %v60_v19  ;;  %v2331_v23 = vsub.f32 %v63_v20, %v63_v20  ;;  %v339_v24 = vand.u32 4294901760, %v2306_v14  ;;  %v346_v25 = vand.u32 4294901760, %v2308_v15 }
   0x7   :  { %8 = vsyncpa [#allocation3], 0  ;;  %2087 = vmatpush3.bf16.msra.mxu1 %v2304_v13  ;;  %2111 = vmatpush3.bf16.msra.mxu0 %v2304_v13  ;;  %v2337_v26 = vsub.f32 %v66_v21, %v66_v21  ;;  %v69_v27 = vsel %vm58_vm0, %v2310_v16, 0  ;;  %v2341_v28 = vunpack.c.l.bf16 %v1766_v17  ;;  %v2343_v29 = vunpack.c.h.bf16 %v1766_v17  ;;  %v1767_v42 = vld [vmem:[%s2990_s0 + $0x18] sm:$0xff]   ;;  %v1768_v47 = vld [vmem:[%s2990_s0 + $0x20] sm:$0xff]  }
   0x8   :  { %2089 = vmatprep.subr.bf16.mxu1 %v2319_v18  ;;  %2113 = vmatprep.subr.bf16.mxu0 %v2319_v18  ;;  %v178_v30 = vand.u32 4294901760, %v2329_v22  ;;  %v188_v31 = vand.u32 4294901760, %v2331_v23  ;;  %v340_v32 = vsub.f32 %v2306_v14, %v339_v24  ;;  %v347_v33 = vsub.f32 %v2308_v15, %v346_v25  ;;  %v1769_v7 = vld [vmem:[%s2990_s0 + $0x28] sm:$0xff]  }
   0x9   :  { %v2116_v34 = vpack.c.bf16 %v346_v25, %v339_v24  ;;  %v198_v35 = vand.u32 4294901760, %v2337_v26  ;;  %v2352_v36 = vsub.f32 %v69_v27, %v69_v27  ;;  %v72_v37 = vsel %vm58_vm0, %v2341_v28, 0 }
   0xa   :  { %v179_v38 = vsub.f32 %v2329_v22, %v178_v30  ;;  %1996 = vmatprep.mubr.f32.mxu0 %v178_v30  ;;  %v189_v39 = vsub.f32 %v2331_v23, %v188_v31  ;;  %v341_v40 = vand.u32 4294901760, %v340_v32  ;;  %v348_v41 = vand.u32 4294901760, %v347_v33 }
   0xb   :  { %2091 = vmatpush3.bf16.msra.mxu1 %v2319_v18  ;;  %2115 = vmatpush3.bf16.msra.mxu0 %v2319_v18  ;;  %v199_v43 = vsub.f32 %v2337_v26, %v198_v35  ;;  %v208_v44 = vand.u32 4294901760, %v2352_v36  ;;  %v2365_v45 = vsub.f32 %v72_v37, %v72_v37  ;;  %v75_v46 = vsel %vm58_vm0, %v2343_v29, 0 }
   0xc   :  { %v180_v48 = vand.u32 4294901760, %v179_v38  ;;  %v190_v49 = vand.u32 4294901760, %v189_v39  ;;  %v2092_v50 = vpack.c.bf16 %v348_v41, %v341_v40  ;;  %2117 = vmatprep.subr.bf16.mxu0 %v2116_v34  ;;  %v2372_v51 = vsub.f32 %v75_v46, %v75_v46 }
   0xd   :  { %v200_v52 = vand.u32 4294901760, %v199_v43  ;;  %v209_v53 = vsub.f32 %v2352_v36, %v208_v44  ;;  %v218_v54 = vand.u32 4294901760, %v2365_v45  ;;  %v2376_v55 = vunpack.c.l.bf16 %v1767_v42 }
   0xe   :  { %1900 = vmatprep.mubr.f32.mxu1 %v180_v48  ;;  %2093 = vmatprep.subr.bf16.mxu1 %v2092_v50  ;;  %v228_v56 = vand.u32 4294901760, %v2372_v51  ;;  %v2379_v57 = vunpack.c.h.bf16 %v1767_v42  ;;  %v2381_v58 = vunpack.c.l.bf16 %v1768_v47  ;;  %v2383_v59 = vunpack.c.h.bf16 %v1768_v47 }
   0xf   :  { %1901 = vmatmul.mubr.f32.vlgmr.msra.gmra.mrb[0].mxu1 %v190_v49  ;;  %1997 = vmatmul.mubr.f32.vlgmr.msra.gmra.mrb[0].mxu0 %v188_v31  ;;  %v210_v60 = vand.u32 4294901760, %v209_v53  ;;  %v219_v61 = vsub.f32 %v2365_v45, %v218_v54  ;;  %v78_v62 = vsel %vm58_vm0, %v2376_v55, 0  ;;  %v2391_v63 = vsub.f32 %v2283_v2, %v114_v6 }
  0x10   :  { %2095 = vmatpush3.bf16.msra.mxu1 %v2092_v50  ;;  %1903 = vmatprep.mubr.f32.mxu1 %v200_v52  ;;  %v229_v0 = vsub.f32 %v2372_v51, %v228_v56  ;;  %v2394_v1 = vsub.f32 %v78_v62, %v78_v62  ;;  %v81_v3 = vsel %vm58_vm0, %v2379_v57, 0  ;;  %v84_v4 = vsel %vm58_vm0, %v2381_v58, 0 }
  0x11   :  { %1999 = vmatprep.mubr.f32.mxu0 %v198_v35  ;;  %2119 = vmatpush3.bf16.msra.mxu0 %v2116_v34  ;;  %v220_v2 = vand.u32 4294901760, %v219_v61  ;;  %v2403_v6 = vsub.f32 %v81_v3, %v81_v3  ;;  %v2405_v8 = vsub.f32 %v84_v4, %v84_v4  ;;  %v87_v17 = vsel %vm58_vm0, %v2383_v59, 0 }
  0x12   :  { %v230_v19 = vand.u32 4294901760, %v229_v0  ;;  %v238_v20 = vand.u32 4294901760, %v2394_v1  ;;  %v2410_v21 = vsub.f32 %v87_v17, %v87_v17  ;;  %v353_v24 = vand.u32 4294901760, %v2391_v63 }
  0x13   :  { %1904 = vmatmul.mubr.f32.gmra.mrb[2].mxu1 %v210_v60  ;;  %2000 = vmatmul.mubr.f32.gmra.mrb[2].mxu0 %v208_v44  ;;  %v248_v25 = vand.u32 4294901760, %v2403_v6  ;;  %v258_v27 = vand.u32 4294901760, %v2405_v8  ;;  %v2418_v30 = vsub.f32 %v2288_v5, %v117_v9  ;;  %v2420_v31 = vunpack.c.l.bf16 %v1769_v7  ;;  %v1770_v9 = vld [vmem:[%s2990_s0 + $0x30] sm:$0xff]   ;;  %v1771_v44 = vld [vmem:[%s2990_s0 + $0x38] sm:$0xff]  }
  0x14   :  { %1906 = vmatprep.mubr.f32.mxu1 %v220_v2  ;;  %2002 = vmatprep.mubr.f32.mxu0 %v218_v54  ;;  %v239_v32 = vsub.f32 %v2394_v1, %v238_v20  ;;  %v268_v33 = vand.u32 4294901760, %v2410_v21  ;;  %v354_v34 = vsub.f32 %v2391_v63, %v353_v24  ;;  %v2425_v35 = vunpack.c.h.bf16 %v1769_v7 }
  0x15   :  { %v249_v37 = vsub.f32 %v2403_v6, %v248_v25  ;;  %v259_v38 = vsub.f32 %v2405_v8, %v258_v27  ;;  %v360_v39 = vand.u32 4294901760, %v2418_v30  ;;  %v90_v5 = vsel %vm58_vm0, %v2420_v31, 0 }
  0x16   :  { %v240_v40 = vand.u32 4294901760, %v239_v32  ;;  %v269_v41 = vsub.f32 %v2410_v21, %v268_v33  ;;  %v355_v42 = vand.u32 4294901760, %v354_v34  ;;  %v2436_v43 = vsub.f32 %v90_v5, %v90_v5 }
  0x17   :  { %1907 = vmatmul.mubr.f32.gmra.mrb[4].mxu1 %v230_v19  ;;  %2003 = vmatmul.mubr.f32.gmra.mrb[4].mxu0 %v228_v56  ;;  %v250_v46 = vand.u32 4294901760, %v249_v37  ;;  %v260_v47 = vand.u32 4294901760, %v259_v38  ;;  %v361_v48 = vsub.f32 %v2418_v30, %v360_v39  ;;  %v2120_v49 = vpack.c.bf16 %v360_v39, %v353_v24 }
  0x18   :  { %1909 = vmatprep.mubr.f32.mxu1 %v240_v40  ;;  %2005 = vmatprep.mubr.f32.mxu0 %v238_v20  ;;  %v270_v50 = vand.u32 4294901760, %v269_v41  ;;  %v278_v52 = vand.u32 4294901760, %v2436_v43  ;;  %v93_v53 = vsel %vm58_vm0, %v2425_v35, 0  ;;  %v2445_v54 = vunpack.c.l.bf16 %v1770_v9 }
  0x19   :  { %v362_v60 = vand.u32 4294901760, %v361_v48  ;;  %2121 = vmatprep.subr.bf16.mxu0 %v2120_v49  ;;  %v2447_v61 = vsub.f32 %v93_v53, %v93_v53  ;;  %v2449_v56 = vunpack.c.h.bf16 %v1770_v9  ;;  %v2451_v62 = vunpack.c.l.bf16 %v1771_v44 }
  0x1a   :  { %v279_v0 = vsub.f32 %v2436_v43, %v278_v52  ;;  %2123 = vmatpush3.bf16.msra.mxu0 %v2120_v49  ;;  %v96_v3 = vsel %vm58_vm0, %v2445_v54, 0  ;;  %v2456_v4 = vunpack.c.h.bf16 %v1771_v44  ;;  %v2100_v7 = vpack.c.bf16 %v2308_v15, %v2306_v14 }
  0x1b   :  { %1910 = vmatmul.mubr.f32.gmra.mrb[6].mxu1 %v250_v46  ;;  %2006 = vmatmul.mubr.f32.gmra.mrb[6].mxu0 %v248_v25  ;;  %v2096_v2 = vpack.c.bf16 %v362_v60, %v355_v42  ;;  %v288_v17 = vand.u32 4294901760, %v2447_v61  ;;  %v2461_v19 = vsub.f32 %v96_v3, %v96_v3  ;;  %v99_v20 = vsel %vm58_vm0, %v2449_v56, 0 }
  0x1c   :  { %1912 = vmatprep.mubr.f32.mxu1 %v260_v47  ;;  %2008 = vmatprep.mubr.f32.mxu0 %v258_v27  ;;  %v280_v24 = vand.u32 4294901760, %v279_v0  ;;  %v2465_v32 = vsub.f32 %v99_v20, %v99_v20  ;;  %v102_v34 = vsel %vm58_vm0, %v2451_v62, 0  ;;  %v105_v14 = vsel %vm58_vm0, %v2456_v4, 0 }
  0x1d   :  { %2097 = vmatprep.subr.bf16.mxu1 %v2096_v2  ;;  %v289_v15 = vsub.f32 %v2447_v61, %v288_v17  ;;  %v298_v25 = vand.u32 4294901760, %v2461_v19  ;;  %v2473_v37 = vsub.f32 %v102_v34, %v102_v34  ;;  %v2475_v38 = vsub.f32 %v105_v14, %v105_v14  ;;  %2125 = vmatprep.subr.bf16.mxu0 %v2304_v13 }
  0x1e   :  { %2099 = vmatpush3.bf16.msra.mxu1 %v2096_v2  ;;  %v308_v27 = vand.u32 4294901760, %v2465_v32  ;;  %v2104_v49 = vpack.c.bf16 %v2418_v30, %v2391_v63  ;;  %vm1237_vm1 = vcmask 97280  }
  0x1f   :  { %1913 = vmatmul.mubr.f32.gmra.mrb[8].mxu1 %v270_v50  ;;  %2009 = vmatmul.mubr.f32.gmra.mrb[8].mxu0 %v268_v33  ;;  %v290_v39 = vand.u32 4294901760, %v289_v15  ;;  %v299_v5 = vsub.f32 %v2461_v19, %v298_v25  ;;  %v318_v9 = vand.u32 4294901760, %v2473_v37  ;;  %v328_v40 = vand.u32 4294901760, %v2475_v38 }
  0x20   :  { %1915 = vmatprep.mubr.f32.mxu1 %v280_v24  ;;  %2011 = vmatprep.mubr.f32.mxu0 %v278_v52  ;;  %v309_v41 = vsub.f32 %v2465_v32, %v308_v27 }
  0x21   :  { %v300_v42 = vand.u32 4294901760, %v299_v5  ;;  %v319_v44 = vsub.f32 %v2473_v37, %v318_v9  ;;  %2101 = vmatprep.subr.bf16.mxu1 %v2100_v7  ;;  %v329_v33 = vsub.f32 %v2475_v38, %v328_v40 }
  0x22   :  { %v310_v46 = vand.u32 4294901760, %v309_v41 }
  0x23   :  { %1916 = vmatmul.mubr.f32.gmra.mrb[10].mxu1 %v290_v39  ;;  %2012 = vmatmul.mubr.f32.gmra.mrb[10].mxu0 %v288_v17  ;;  %v320_v47 = vand.u32 4294901760, %v319_v44  ;;  %v330_v48 = vand.u32 4294901760, %v329_v33 }
  0x24   :  { %1918 = vmatprep.mubr.f32.mxu1 %v300_v42  ;;  %2014 = vmatprep.mubr.f32.mxu0 %v298_v25 }
  0x27   :  { %1919 = vmatmul.mubr.f32.gmra.mrb[12].mxu1 %v310_v46  ;;  %2015 = vmatmul.mubr.f32.gmra.mrb[12].mxu0 %v308_v27 }
  0x28   :  { %1921 = vmatprep.mubr.f32.mxu1 %v320_v47  ;;  %2017 = vmatprep.mubr.f32.mxu0 %v318_v9 }
  0x2b   :  { %1922 = vmatmul.mubr.f32.gmra.mrb[14].mxu1 %v330_v48  ;;  %2018 = vmatmul.mubr.f32.gmra.mrb[14].mxu0 %v328_v40 }
  0x2c   :  { %1932 = vmatprep.mubr.msk.f32.mxu1 %vm58_vm0, %v2298_v10  ;;  %2028 = vmatprep.mubr.msk.f32.mxu0 %vm58_vm0, %v2298_v10 }
  0x2f   :  { %1933 = vmatmul.mubr.msk.f32.vlgmr.msra.gmra.mrb[0].mxu1 %vm58_vm0, %v2300_v11  ;;  %2029 = vmatmul.mubr.msk.f32.vlgmr.msra.gmra.mrb[0].mxu0 %vm58_vm0, %v2300_v11 }
  0x30   :  { %2103 = vmatpush3.bf16.msra.mxu1 %v2100_v7  ;;  %1935 = vmatprep.mubr.msk.f32.mxu1 %vm58_vm0, %v2302_v12 }
  0x31   :  { %2031 = vmatprep.mubr.msk.f32.mxu0 %vm58_vm0, %v2302_v12  ;;  %2127 = vmatpush3.bf16.msra.mxu0 %v2304_v13 }
  0x32   :  { %2105 = vmatprep.subr.bf16.mxu1 %v2104_v49  ;;  %2129 = vmatprep.subr.bf16.mxu0 %v2319_v18 }
  0x33   :  { %1936 = vmatmul.mubr.msk.f32.gmra.mrb[2].mxu1 %vm58_vm0, %v2310_v16  ;;  %2032 = vmatmul.mubr.msk.f32.gmra.mrb[2].mxu0 %vm58_vm0, %v2310_v16 }
  0x34   :  { %1938 = vmatprep.mubr.msk.f32.mxu1 %vm58_vm0, %v2341_v28  ;;  %2034 = vmatprep.mubr.msk.f32.mxu0 %vm58_vm0, %v2341_v28 }
  0x35   :  { %2107 = vmatpush3.bf16.msra.mxu1 %v2104_v49  ;;  %2131 = vmatpush3.bf16.msra.mxu0 %v2319_v18 }
  0x37   :  { %1939 = vmatmul.mubr.msk.f32.gmra.mrb[4].mxu1 %vm58_vm0, %v2343_v29  ;;  %2035 = vmatmul.mubr.msk.f32.gmra.mrb[4].mxu0 %vm58_vm0, %v2343_v29 }
  0x38   :  { %1941 = vmatprep.mubr.msk.f32.mxu1 %vm58_vm0, %v2376_v55  ;;  %2037 = vmatprep.mubr.msk.f32.mxu0 %vm58_vm0, %v2376_v55 }
  0x3b   :  { %1942 = vmatmul.mubr.msk.f32.gmra.mrb[6].mxu1 %vm58_vm0, %v2379_v57  ;;  %2038 = vmatmul.mubr.msk.f32.gmra.mrb[6].mxu0 %vm58_vm0, %v2379_v57 }
  0x3c   :  { %1944 = vmatprep.mubr.msk.f32.mxu1 %vm58_vm0, %v2381_v58  ;;  %2040 = vmatprep.mubr.msk.f32.mxu0 %vm58_vm0, %v2381_v58 }
  0x3f   :  { %1945 = vmatmul.mubr.msk.f32.gmra.mrb[8].mxu1 %vm58_vm0, %v2383_v59  ;;  %2041 = vmatmul.mubr.msk.f32.gmra.mrb[8].mxu0 %vm58_vm0, %v2383_v59 }
  0x40   :  { %1947 = vmatprep.mubr.msk.f32.mxu1 %vm58_vm0, %v2420_v31  ;;  %2043 = vmatprep.mubr.msk.f32.mxu0 %vm58_vm0, %v2420_v31 }
  0x43   :  { %1948 = vmatmul.mubr.msk.f32.gmra.mrb[10].mxu1 %vm58_vm0, %v2425_v35  ;;  %2044 = vmatmul.mubr.msk.f32.gmra.mrb[10].mxu0 %vm58_vm0, %v2425_v35 }
  0x44   :  { %1950 = vmatprep.mubr.msk.f32.mxu1 %vm58_vm0, %v2445_v54  ;;  %2046 = vmatprep.mubr.msk.f32.mxu0 %vm58_vm0, %v2445_v54 }
  0x47   :  { %1951 = vmatmul.mubr.msk.f32.gmra.mrb[12].mxu1 %vm58_vm0, %v2449_v56  ;;  %2047 = vmatmul.mubr.msk.f32.gmra.mrb[12].mxu0 %vm58_vm0, %v2449_v56 }
  0x48   :  { %1953 = vmatprep.mubr.msk.f32.mxu1 %vm58_vm0, %v2451_v62  ;;  %2049 = vmatprep.mubr.msk.f32.mxu0 %vm58_vm0, %v2451_v62 }
  0x4b   :  { %1954 = vmatmul.mubr.msk.f32.gmra.mrb[14].mxu1 %vm58_vm0, %v2456_v4  ;;  %2050 = vmatmul.mubr.msk.f32.gmra.mrb[14].mxu0 %vm58_vm0, %v2456_v4 }
  0x4c   :  { %1964 = vmatprep.mubr.f32.mxu1 %v2329_v22  ;;  %2060 = vmatprep.mubr.msk.f32.mxu0 %vm58_vm0, %v2298_v10  ;;  %v2605_v10 = vld [vmem:[%s2992_s2] ss:$0 sm:$0xff]  ;;  %s2253_s2 = smov [#allocation2]  }
  0x4d   :  { %s1676_s9 = sshll.u32 %s2253_s2, 4  ;;  %s1677_s9 = int_to_ptr.vmem [resolvable:$true] %s1676_s9 }
  0x4e   :  { %s2229_s10 = scalar_lea.vmem %s1677_s9, 16  ;;  %s2233_s11 = scalar_lea.vmem %s1677_s9, 32 }
  0x4f   :  { %1965 = vmatmul.mubr.f32.vlgmr.msra.gmra.mrb[0].mxu1 %v2331_v23  ;;  %2061 = vmatmul.mubr.msk.f32.vlgmr.msra.gmra.mrb[0].mxu0 %vm58_vm0, %v2300_v11  ;;  %p2230_p0 = scmp.ne.s32.totalorder %s1677_s9, %s2229_s10  ;;  %p2234_p1 = scmp.lt.s32.totalorder %s1677_s9, %s1677_s9 }
  0x50   :  { %1967 = vmatprep.mubr.f32.mxu1 %v2337_v26  ;;  %2063 = vmatprep.mubr.msk.f32.mxu0 %vm58_vm0, %v2302_v12  ;;  %p2235_p2 = scmp.lt.s32.totalorder %s2233_s11, %s2229_s10 }
  0x52   :  { %p2236_p3 = por %p2235_p2, %p2234_p1 }
  0x53   :  { %1968 = vmatmul.mubr.f32.gmra.mrb[2].mxu1 %v2352_v36  ;;  %2064 = vmatmul.mubr.msk.f32.gmra.mrb[2].mxu0 %vm58_vm0, %v2310_v16 }
  0x54   :  { %1970 = vmatprep.mubr.f32.mxu1 %v2365_v45  ;;  %2066 = vmatprep.mubr.msk.f32.mxu0 %vm58_vm0, %v2341_v28  ;;  %p2237_p4 = pnand %p2236_p3, %p2230_p0 }
  0x57   :  { %1971 = vmatmul.mubr.f32.gmra.mrb[4].mxu1 %v2372_v51  ;;  %2067 = vmatmul.mubr.msk.f32.gmra.mrb[4].mxu0 %vm58_vm0, %v2343_v29 }
  0x58   :  { %1973 = vmatprep.mubr.f32.mxu1 %v2394_v1  ;;  %2069 = vmatprep.mubr.msk.f32.mxu0 %vm58_vm0, %v2376_v55 }
  0x5b   :  { %1974 = vmatmul.mubr.f32.gmra.mrb[6].mxu1 %v2403_v6  ;;  %2070 = vmatmul.mubr.msk.f32.gmra.mrb[6].mxu0 %vm58_vm0, %v2379_v57 }
  0x5c   :  { %1976 = vmatprep.mubr.f32.mxu1 %v2405_v8  ;;  %2072 = vmatprep.mubr.msk.f32.mxu0 %vm58_vm0, %v2381_v58 }
  0x5f   :  { %1977 = vmatmul.mubr.f32.gmra.mrb[8].mxu1 %v2410_v21  ;;  %2073 = vmatmul.mubr.msk.f32.gmra.mrb[8].mxu0 %vm58_vm0, %v2383_v59 }
  0x60   :  { %1979 = vmatprep.mubr.f32.mxu1 %v2436_v43  ;;  %2075 = vmatprep.mubr.msk.f32.mxu0 %vm58_vm0, %v2420_v31 }
  0x63   :  { %1980 = vmatmul.mubr.f32.gmra.mrb[10].mxu1 %v2447_v61  ;;  %2076 = vmatmul.mubr.msk.f32.gmra.mrb[10].mxu0 %vm58_vm0, %v2425_v35 }
  0x64   :  { %1982 = vmatprep.mubr.f32.mxu1 %v2461_v19  ;;  %2078 = vmatprep.mubr.msk.f32.mxu0 %vm58_vm0, %v2445_v54 }
  0x67   :  { %1983 = vmatmul.mubr.f32.gmra.mrb[12].mxu1 %v2465_v32  ;;  %2079 = vmatmul.mubr.msk.f32.gmra.mrb[12].mxu0 %vm58_vm0, %v2449_v56 }
  0x68   :  { %1985 = vmatprep.mubr.f32.mxu1 %v2473_v37  ;;  %2081 = vmatprep.mubr.msk.f32.mxu0 %vm58_vm0, %v2451_v62 }
  0x6b   :  { %1986 = vmatmul.mubr.f32.gmra.mrb[14].mxu1 %v2475_v38  ;;  %2082 = vmatmul.mubr.msk.f32.gmra.mrb[14].mxu0 %vm58_vm0, %v2456_v4 }
 0x122   :  { %v1966_v11 = vpop.f32.mrb[0].mxu1  ;;  %v2062_v12 = vpop.f32.mrb[0].mxu0 }
 0x123   :  { %v2132_v13 = vadd.f32 %v1966_v11, %v2605_v10  ;;  %v593_v16 = vpop.f32.mrb[1].mxu1  ;;  %v1143_v18 = vpop.f32.mrb[1].mxu0 }
 0x124   :  { %v2134_v22 = vadd.f32 %v2605_v10, %v593_v16 }
 0x125   :  { %v2609_v23 = vadd.f32 %v2132_v13, %v2062_v12 }
 0x126   :  { %v2611_v26 = vadd.f32 %v2134_v22, %v1143_v18  ;;  %v1969_v28 = vpop.f32.mrb[2].mxu1  ;;  %v2065_v29 = vpop.f32.mrb[2].mxu0 }
 0x127   :  { %v2136_v36 = vadd.f32 %v1969_v28, %v2605_v10  ;;  %v607_v45 = vpop.f32.mrb[3].mxu1  ;;  %v1155_v51 = vpop.f32.mrb[3].mxu0  ;;  %v1241_v55 = vsel %vm1237_vm1, %v2609_v23, -inf }
 0x128   :  { %v2138_v57 = vadd.f32 %v2605_v10, %v607_v45  ;;  %1242 = vmax.xlane.f32.xlu0 %v1241_v55  ;;  %v1238_v30 = vsel %vm1237_vm1, %v2611_v26, -inf }
 0x129   :  { %v2617_v58 = vadd.f32 %v2136_v36, %v2065_v29 }
 0x12a   :  { %v2619_v59 = vadd.f32 %v2138_v57, %v1155_v51  ;;  %v1972_v63 = vpop.f32.mrb[4].mxu1  ;;  %v2068_v1 = vpop.f32.mrb[4].mxu0 }
 0x12b   :  { %v2140_v6 = vadd.f32 %v1972_v63, %v2605_v10  ;;  %v621_v8 = vpop.f32.mrb[5].mxu1  ;;  %v1167_v21 = vpop.f32.mrb[5].mxu0  ;;  %v1247_v31 = vsel %vm1237_vm1, %v2617_v58, -inf }
 0x12c   :  { %v2142_v35 = vadd.f32 %v2605_v10, %v621_v8  ;;  %1239 = vmax.xlane.f32.xlu0 %v1238_v30  ;;  %1248 = vmax.xlane.f32.xlu1 %v1247_v31  ;;  %v1244_v56 = vsel %vm1237_vm1, %v2619_v59, -inf  ;;  %v1286_v8 = vlaneseq }
 0x12d   :  { %v2627_v43 = vadd.f32 %v2140_v6, %v2068_v1 }
 0x12e   :  { %v2629_v50 = vadd.f32 %v2142_v35, %v1167_v21  ;;  %v1975_v52 = vpop.f32.mrb[6].mxu1  ;;  %v2071_v53 = vpop.f32.mrb[6].mxu0  ;;  %v2688_v21 = vand.u32 127, %v1286_v8 }
 0x12f   :  { %v2144_v54 = vadd.f32 %v1975_v52, %v2605_v10  ;;  %v635_v60 = vpop.f32.mrb[7].mxu1  ;;  %v1179_v61 = vpop.f32.mrb[7].mxu0  ;;  %v1253_v24 = vsel %vm1237_vm1, %v2627_v43, -inf }
 0x130   :  { %v2146_v62 = vadd.f32 %v2605_v10, %v635_v60  ;;  %1245 = vmax.xlane.f32.xlu1 %v1244_v56  ;;  %v1250_v0 = vsel %vm1237_vm1, %v2629_v50, -inf }
 0x131   :  { %v2637_v3 = vadd.f32 %v2144_v54, %v2071_v53  ;;  %1251 = vmax.xlane.f32.xlu0 %v1250_v0 }
 0x132   :  { %v2639_v4 = vadd.f32 %v2146_v62, %v1179_v61  ;;  %v1978_v7 = vpop.f32.mrb[8].mxu1  ;;  %v2074_v2 = vpop.f32.mrb[8].mxu0 }
 0x133   :  { %v2148_v17 = vadd.f32 %v1978_v7, %v2605_v10  ;;  %v649_v19 = vpop.f32.mrb[9].mxu1  ;;  %v1191_v20 = vpop.f32.mrb[9].mxu0  ;;  %v1259_v5 = vsel %vm1237_vm1, %v2637_v3, -inf }
 0x134   :  { %v2150_v32 = vadd.f32 %v2605_v10, %v649_v19  ;;  %1254 = vmax.xlane.f32.xlu1 %v1253_v24  ;;  %v1256_v34 = vsel %vm1237_vm1, %v2639_v4, -inf }
 0x135   :  { %v2647_v14 = vadd.f32 %v2148_v17, %v2074_v2  ;;  %1257 = vmax.xlane.f32.xlu0 %v1256_v34 }
 0x136   :  { %v2649_v15 = vadd.f32 %v2150_v32, %v1191_v20  ;;  %v1981_v25 = vpop.f32.mrb[10].mxu1  ;;  %v2077_v37 = vpop.f32.mrb[10].mxu0 }
 0x137   :  { %v2152_v38 = vadd.f32 %v1981_v25, %v2605_v10  ;;  %v663_v27 = vpop.f32.mrb[11].mxu1  ;;  %v1203_v39 = vpop.f32.mrb[11].mxu0  ;;  %v1265_v49 = vsel %vm1237_vm1, %v2647_v14, -inf }
 0x138   :  { %v2154_v9 = vadd.f32 %v2605_v10, %v663_v27  ;;  %1260 = vmax.xlane.f32.xlu1 %v1259_v5  ;;  %v1262_v40 = vsel %vm1237_vm1, %v2649_v15, -inf }
 0x139   :  { %v2657_v41 = vadd.f32 %v2152_v38, %v2077_v37  ;;  %1263 = vmax.xlane.f32.xlu0 %v1262_v40 }
 0x13a   :  { %v2659_v42 = vadd.f32 %v2154_v9, %v1203_v39  ;;  %v1984_v44 = vpop.f32.mrb[12].mxu1  ;;  %v2080_v46 = vpop.f32.mrb[12].mxu0 }
 0x13b   :  { %v2156_v33 = vadd.f32 %v1984_v44, %v2605_v10  ;;  %v677_v47 = vpop.f32.mrb[13].mxu1  ;;  %v1215_v48 = vpop.f32.mrb[13].mxu0  ;;  %v1271_v45 = vsel %vm1237_vm1, %v2657_v41, -inf }
 0x13c   :  { %v2158_v11 = vadd.f32 %v2605_v10, %v677_v47  ;;  %1266 = vmax.xlane.f32.xlu1 %v1265_v49  ;;  %v1268_v12 = vsel %vm1237_vm1, %v2659_v42, -inf }
 0x13d   :  { %v2667_v13 = vadd.f32 %v2156_v33, %v2080_v46  ;;  %1269 = vmax.xlane.f32.xlu0 %v1268_v12 }
 0x13e   :  { %v2669_v16 = vadd.f32 %v2158_v11, %v1215_v48  ;;  %v1987_v18 = vpop.f32.mrb[14].mxu1  ;;  %v2083_v22 = vpop.f32.mrb[14].mxu0 }
 0x13f   :  { %v2160_v28 = vadd.f32 %v1987_v18, %v2605_v10  ;;  %v691_v29 = vpop.f32.mrb[15].mxu1  ;;  %v1227_v36 = vpop.f32.mrb[15].mxu0  ;;  %v1277_v1 = vsel %vm1237_vm1, %v2667_v13, -inf }
 0x140   :  { %v2162_v51 = vadd.f32 %v2605_v10, %v691_v29  ;;  %1272 = vmax.xlane.f32.xlu1 %v1271_v45  ;;  %v1274_v55 = vsel %vm1237_vm1, %v2669_v16, -inf }
 0x141   :  { %v2677_v57 = vadd.f32 %v2160_v28, %v2083_v22  ;;  %1275 = vmax.xlane.f32.xlu0 %v1274_v55 }
 0x142   :  { %v2679_v63 = vadd.f32 %v2162_v51, %v1227_v36 }
 0x143   :  { %v1283_v10 = vsel %vm1237_vm1, %v2677_v57, -inf }
 0x144   :  { %1278 = vmax.xlane.f32.xlu1 %v1277_v1  ;;  %v1280_v6 = vsel %vm1237_vm1, %v2679_v63, -inf }
 0x145   :  { %1281 = vmax.xlane.f32.xlu0 %v1280_v6 }
 0x148   :  { %1284 = vmax.xlane.f32.xlu1 %v1283_v10 }
 0x1b5   :  { %v1243_v30 = vpop.xlane.xlu0 %1242 }
 0x1b6   :  { %vm1289_vm2 = vcmp.eq.f32.partialorder %v2609_v23, %v1243_v30 }
 0x1b7   :  { %v1305_v31 = vsel %vm1289_vm2, %v2688_v21, 12 }
 0x1b8   :  { %v2693_v35 = vsel %vm1237_vm1, %v1305_v31, 2147483647 }
 0x1b9   :  { %v1240_v52 = vpop.xlane.xlu0 %1239  ;;  %v1249_v53 = vpop.xlane.xlu1 %1248  ;;  %v1337_v54 = vshra.s32 %v2693_v35, 16 }
 0x1ba   :  { %vm1288_vm3 = vcmp.eq.f32.partialorder %v2611_v26, %v1240_v52  ;;  %vm1291_vm4 = vcmp.eq.f32.partialorder %v2617_v58, %v1249_v53 }
 0x1bb   :  { %v1304_v60 = vsel %vm1288_vm3, %v2688_v21, 12  ;;  %v1307_v61 = vsel %vm1291_vm4, %v2688_v21, 12  ;;  %v2700_v56 = vcvt.s32.f32 %v1337_v54 }
 0x1bc   :  { %v2703_v23 = vsel %vm1237_vm1, %v1304_v60, 2147483647  ;;  %v2706_v62 = vsel %vm1237_vm1, %v1307_v61, 2147483647 }
 0x1bd   :  { %v1246_v0 = vpop.xlane.xlu1 %1245  ;;  %1340 = vmin.xlane.f32.xlu1 %v2700_v56  ;;  %v1367_v7 = vshra.s32 %v2706_v62, 16  ;;  %v1322_v26 = vshra.s32 %v2703_v23, 16 }
 0x1be   :  { %vm1290_vm5 = vcmp.eq.f32.partialorder %v2619_v59, %v1246_v0  ;;  %v1252_v58 = vpop.xlane.xlu0 %1251 }
 0x1bf   :  { %v1306_v2 = vsel %vm1290_vm5, %v2688_v21, 12  ;;  %vm1292_vm6 = vcmp.eq.f32.partialorder %v2629_v50, %v1252_v58  ;;  %v2714_v17 = vcvt.s32.f32 %v1367_v7  ;;  %v2716_v19 = vcvt.s32.f32 %v1322_v26 }
 0x1c0   :  { %v2719_v20 = vsel %vm1237_vm1, %v1306_v2, 2147483647  ;;  %v1308_v24 = vsel %vm1292_vm6, %v2688_v21, 12 }
 0x1c1   :  { %v2723_v32 = vsel %vm1237_vm1, %v1308_v24, 2147483647  ;;  %v1255_v34 = vpop.xlane.xlu1 %1254  ;;  %1370 = vmin.xlane.f32.xlu1 %v2714_v17  ;;  %1325 = vmin.xlane.f32.xlu0 %v2716_v19  ;;  %v1352_v59 = vshra.s32 %v2719_v20, 16 }
 0x1c2   :  { %vm1293_vm7 = vcmp.eq.f32.partialorder %v2627_v43, %v1255_v34  ;;  %v1258_v50 = vpop.xlane.xlu0 %1257  ;;  %v1382_v38 = vshra.s32 %v2723_v32, 16 }
 0x1c3   :  { %v1309_v25 = vsel %vm1293_vm7, %v2688_v21, 12  ;;  %vm1294_vm8 = vcmp.eq.f32.partialorder %v2639_v4, %v1258_v50  ;;  %v2731_v37 = vcvt.s32.f32 %v1352_v59 }
 0x1c4   :  { %v2735_v27 = vsel %vm1237_vm1, %v1309_v25, 2147483647  ;;  %v1310_v39 = vsel %vm1294_vm8, %v2688_v21, 12  ;;  %v2749_v33 = vcvt.s32.f32 %v1382_v38 }
 0x1c5   :  { %v2739_v5 = vsel %vm1237_vm1, %v1310_v39, 2147483647  ;;  %v1261_v9 = vpop.xlane.xlu1 %1260  ;;  %1355 = vmin.xlane.f32.xlu0 %v2731_v37  ;;  %v1397_v43 = vshra.s32 %v2735_v27, 16  ;;  %v1336_v39 = vand.u32 65535, %v2693_v35  ;;  %v1351_v35 = vand.u32 65535, %v2719_v20 }
 0x1c6   :  { %vm1295_vm9 = vcmp.eq.f32.partialorder %v2637_v3, %v1261_v9  ;;  %v1264_v4 = vpop.xlane.xlu0 %1263  ;;  %v1412_v40 = vshra.s32 %v2739_v5, 16 }
 0x1c7   :  { %v1311_v44 = vsel %vm1295_vm9, %v2688_v21, 12  ;;  %vm1296_vm10 = vcmp.eq.f32.partialorder %v2649_v15, %v1264_v4  ;;  %v2747_v46 = vcvt.s32.f32 %v1397_v43  ;;  %v1338_v43 = vcvt.s32.f32 %v1336_v39 }
 0x1c8   :  { %v2752_v47 = vsel %vm1237_vm1, %v1311_v44, 2147483647  ;;  %v1312_v48 = vsel %vm1296_vm10, %v2688_v21, 12  ;;  %v2762_v12 = vcvt.s32.f32 %v1412_v40  ;;  %v1366_v4 = vand.u32 65535, %v2706_v62 }
 0x1c9   :  { %v2756_v49 = vsel %vm1237_vm1, %v1312_v48, 2147483647  ;;  %v1267_v3 = vpop.xlane.xlu1 %1266  ;;  %1400 = vmin.xlane.f32.xlu1 %v2747_v46  ;;  %1385 = vmin.xlane.f32.xlu0 %v2749_v33  ;;  %v1427_v11 = vshra.s32 %v2752_v47, 16  ;;  %v1321_v40 = vand.u32 65535, %v2703_v23 }
 0x1ca   :  { %vm1297_vm11 = vcmp.eq.f32.partialorder %v2647_v14, %v1267_v3  ;;  %v1270_v15 = vpop.xlane.xlu0 %1269  ;;  %v1442_v28 = vshra.s32 %v2756_v49, 16 }
 0x1cb   :  { %v1313_v18 = vsel %vm1297_vm11, %v2688_v21, 12  ;;  %vm1298_vm12 = vcmp.eq.f32.partialorder %v2659_v42, %v1270_v15  ;;  %v2766_v22 = vcvt.s32.f32 %v1427_v11  ;;  %v1368_v11 = vcvt.s32.f32 %v1366_v4 }
 0x1cc   :  { %v2770_v29 = vsel %vm1237_vm1, %v1313_v18, 2147483647  ;;  %v1314_v36 = vsel %vm1298_vm12, %v2688_v21, 12  ;;  %v2785_v10 = vcvt.s32.f32 %v1442_v28  ;;  %v1323_v15 = vcvt.s32.f32 %v1321_v40 }
 0x1cd   :  { %v2774_v45 = vsel %vm1237_vm1, %v1314_v36, 2147483647  ;;  %v1273_v14 = vpop.xlane.xlu1 %1272  ;;  %1430 = vmin.xlane.f32.xlu1 %v2766_v22  ;;  %1415 = vmin.xlane.f32.xlu0 %v2762_v12  ;;  %v1457_v51 = vshra.s32 %v2770_v29, 16  ;;  %v1353_v18 = vcvt.s32.f32 %v1351_v35  ;;  %v1396_v28 = vand.u32 65535, %v2735_v27 }
 0x1ce   :  { %vm1299_vm13 = vcmp.eq.f32.partialorder %v2657_v41, %v1273_v14  ;;  %v1276_v42 = vpop.xlane.xlu0 %1275  ;;  %v1472_v55 = vshra.s32 %v2774_v45, 16  ;;  %v1381_v36 = vand.u32 65535, %v2723_v32 }
 0x1cf   :  { %v1315_v1 = vsel %vm1299_vm13, %v2688_v21, 12  ;;  %vm1300_vm14 = vcmp.eq.f32.partialorder %v2669_v16, %v1276_v42  ;;  %v2783_v6 = vcvt.s32.f32 %v1457_v51  ;;  %v1426_v42 = vand.u32 65535, %v2752_v47 }
 0x1d0   :  { %v2788_v30 = vsel %vm1237_vm1, %v1315_v1, 2147483647  ;;  %v1316_v31 = vsel %vm1300_vm14, %v2688_v21, 12  ;;  %v2798_v54 = vcvt.s32.f32 %v1472_v55  ;;  %v1383_v51 = vcvt.s32.f32 %v1381_v36 }
 0x1d1   :  { %v2792_v52 = vsel %vm1237_vm1, %v1316_v31, 2147483647  ;;  %v1279_v41 = vpop.xlane.xlu1 %1278  ;;  %1460 = vmin.xlane.f32.xlu1 %v2783_v6  ;;  %1445 = vmin.xlane.f32.xlu0 %v2785_v10  ;;  %v1487_v53 = vshra.s32 %v2788_v30, 16  ;;  %v1411_v55 = vand.u32 65535, %v2739_v5  ;;  %v1428_v31 = vcvt.s32.f32 %v1426_v42 }
 0x1d2   :  { %vm1301_vm15 = vcmp.eq.f32.partialorder %v2667_v13, %v1279_v41  ;;  %v1282_v16 = vpop.xlane.xlu0 %1281  ;;  %v1502_v0 = vshra.s32 %v2792_v52, 16  ;;  %v1456_v47 = vand.u32 65535, %v2770_v29  ;;  %v1441_v5 = vand.u32 65535, %v2756_v49 }
 0x1d3   :  { %v1317_v60 = vsel %vm1301_vm15, %v2688_v21, 12  ;;  %vm1302_vm0 = vcmp.eq.f32.partialorder %v2679_v63, %v1282_v16  ;;  %v2802_v61 = vcvt.s32.f32 %v1487_v53  ;;  %v1413_v41 = vcvt.s32.f32 %v1411_v55 }
 0x1d4   :  { %v2806_v7 = vsel %vm1237_vm1, %v1317_v60, 2147483647  ;;  %v1318_v26 = vsel %vm1302_vm0, %v2688_v21, 12  ;;  %v2819_v34 = vcvt.s32.f32 %v1502_v0  ;;  %v1458_v60 = vcvt.s32.f32 %v1456_v47 }
 0x1d5   :  { %v2810_v58 = vsel %vm1237_vm1, %v1318_v26, 2147483647  ;;  %1490 = vmin.xlane.f32.xlu1 %v2802_v61  ;;  %v1285_v13 = vpop.xlane.xlu1 %1284  ;;  %1475 = vmin.xlane.f32.xlu0 %v2798_v54  ;;  %v1517_v2 = vshra.s32 %v2806_v7, 16  ;;  %v1443_v0 = vcvt.s32.f32 %v1441_v5  ;;  %v1486_v29 = vand.u32 65535, %v2788_v30 }
 0x1d6   :  { %vm1303_vm2 = vcmp.eq.f32.partialorder %v2677_v57, %v1285_v13  ;;  %v1532_v59 = vshra.s32 %v2810_v58, 16  ;;  %v1471_v49 = vand.u32 65535, %v2774_v45  ;;  %v1516_v30 = vand.u32 65535, %v2806_v7 }
 0x1d7   :  { %v1319_v63 = vsel %vm1303_vm2, %v2688_v21, 12  ;;  %v2817_v24 = vcvt.s32.f32 %v1517_v2  ;;  %v1488_v2 = vcvt.s32.f32 %v1486_v29  ;;  %v1501_v45 = vand.u32 65535, %v2792_v52 }
 0x1d8   :  { %v2823_v50 = vsel %vm1237_vm1, %v1319_v63, 2147483647  ;;  %v2830_v57 = vcvt.s32.f32 %v1532_v59  ;;  %v1473_v63 = vcvt.s32.f32 %v1471_v49  ;;  %v1518_v39 = vcvt.s32.f32 %v1516_v30 }
 0x1d9   :  { %1520 = vmin.xlane.f32.xlu1 %v2817_v24  ;;  %1505 = vmin.xlane.f32.xlu0 %v2819_v34  ;;  %v1547_v25 = vshra.s32 %v2823_v50, 16  ;;  %v1546_v7 = vand.u32 65535, %v2823_v50  ;;  %v1531_v52 = vand.u32 65535, %v2810_v58  ;;  %v1564_v50 = vadd.s32 4294967288, %v2688_v21 }
 0x1da   :  { %v1571_v55 = vadd.s32 4294967280, %v2688_v21  ;;  %v1592_v29 = vadd.s32 4294967256, %v2688_v21 }
 0x1db   :  { %v2828_v38 = vcvt.s32.f32 %v1547_v25 }
 0x1dd   :  { %1550 = vmin.xlane.f32.xlu1 %v2828_v38  ;;  %1535 = vmin.xlane.f32.xlu0 %v2830_v57 }
 0x24a   :  { %v2835_v9 = vpop.xlane.xlu1 %1340 }
 0x24b   :  { %vm1342_vm1 = vcmp.eq.f32.partialorder %v2700_v56, %v2835_v9 }
 0x24c   :  { %v1343_v44 = vsel %vm1342_vm1, %v1338_v43, inf  ;;  %v1503_v43 = vcvt.s32.f32 %v1501_v45  ;;  %vm1569_vm1 = vcmask 130112  }
 0x24d   :  { %1344 = vmin.xlane.f32.xlu1 %v1343_v44  ;;  %v1548_v44 = vcvt.s32.f32 %v1546_v7 }
 0x24e   :  { %v2841_v48 = vpop.xlane.xlu1 %1370  ;;  %v2843_v3 = vpop.xlane.xlu0 %1325 }
 0x24f   :  { %vm1372_vm3 = vcmp.eq.f32.partialorder %v2714_v17, %v2841_v48  ;;  %vm1327_vm4 = vcmp.eq.f32.partialorder %v2716_v19, %v2843_v3  ;;  %v1398_v19 = vcvt.s32.f32 %v1396_v28  ;;  %v1377_v35 = vcvt.f32.s32 %v2841_v48 }
 0x250   :  { %v1373_v23 = vsel %vm1372_vm3, %v1368_v11, inf  ;;  %v1328_v62 = vsel %vm1327_vm4, %v1323_v15, inf  ;;  %v1533_v11 = vcvt.s32.f32 %v1531_v52  ;;  %v1347_v15 = vcvt.f32.s32 %v2835_v9 }
 0x251   :  { %1374 = vmin.xlane.f32.xlu1 %v1373_v23  ;;  %1329 = vmin.xlane.f32.xlu0 %v1328_v62  ;;  %v1332_v23 = vcvt.f32.s32 %v2843_v3  ;;  %vm1576_vm3 = vcmask 195712   ;;  %vm1583_vm4 = vcmask 261312  }
 0x252   :  { %v2850_v56 = vpop.xlane.xlu0 %1355 }
 0x253   :  { %vm1357_vm5 = vcmp.eq.f32.partialorder %v2731_v37, %v2850_v56 }
 0x254   :  { %v1358_v20 = vsel %vm1357_vm5, %v1353_v18, inf  ;;  %vm1590_vm5 = vcmask 326912  }
 0x255   :  { %1359 = vmin.xlane.f32.xlu0 %v1358_v20  ;;  %v1378_v20 = vshll.u32 %v1377_v35, 16 }
 0x256   :  { %v2856_v17 = vpop.xlane.xlu1 %1400  ;;  %v2858_v14 = vpop.xlane.xlu0 %1385 }
 0x257   :  { %vm1402_vm6 = vcmp.eq.f32.partialorder %v2747_v46, %v2856_v17  ;;  %vm1387_vm7 = vcmp.eq.f32.partialorder %v2749_v33, %v2858_v14  ;;  %v1392_v28 = vcvt.f32.s32 %v2858_v14 }
 0x258   :  { %v1403_v32 = vsel %vm1402_vm6, %v1398_v19, inf  ;;  %v1388_v37 = vsel %vm1387_vm7, %v1383_v51, inf  ;;  %v1333_v51 = vshll.u32 %v1332_v23, 16  ;;  %vm1597_vm6 = vcmask 392512  }
 0x259   :  { %1404 = vmin.xlane.f32.xlu1 %v1403_v32  ;;  %1389 = vmin.xlane.f32.xlu0 %v1388_v37  ;;  %vm1604_vm7 = vcmask 458112  }
 0x25a   :  { %v2866_v27 = vpop.xlane.xlu1 %1430  ;;  %v2868_v1 = vpop.xlane.xlu0 %1415 }
 0x25b   :  { %vm1432_vm8 = vcmp.eq.f32.partialorder %v2766_v22, %v2866_v27  ;;  %vm1417_vm9 = vcmp.eq.f32.partialorder %v2762_v12, %v2868_v1  ;;  %v1437_v19 = vcvt.f32.s32 %v2866_v27  ;;  %v1422_v9 = vcvt.f32.s32 %v2868_v1 }
 0x25c   :  { %v1433_v46 = vsel %vm1432_vm8, %v1428_v31, inf  ;;  %v1418_v33 = vsel %vm1417_vm9, %v1413_v41, inf  ;;  %v1393_v31 = vshll.u32 %v1392_v28, 16  ;;  %v1578_v27 = vadd.s32 4294967272, %v2688_v21 }
 0x25d   :  { %1434 = vmin.xlane.f32.xlu1 %v1433_v46  ;;  %1419 = vmin.xlane.f32.xlu0 %v1418_v33  ;;  %v1438_v47 = vshll.u32 %v1437_v19, 16  ;;  %v1423_v5 = vshll.u32 %v1422_v9, 16  ;;  %vm1611_vm8 = vcmask 523712   ;;  %vm1618_vm9 = vcmask 589312  }
 0x25e   :  { %v2876_v53 = vpop.xlane.xlu1 %1460  ;;  %v2878_v16 = vpop.xlane.xlu0 %1445 }
 0x25f   :  { %vm1462_vm10 = vcmp.eq.f32.partialorder %v2783_v6, %v2876_v53  ;;  %vm1447_vm11 = vcmp.eq.f32.partialorder %v2785_v10, %v2878_v16  ;;  %v1467_v3 = vcvt.f32.s32 %v2876_v53  ;;  %v1452_v41 = vcvt.f32.s32 %v2878_v16 }
 0x260   :  { %v1463_v12 = vsel %vm1462_vm10, %v1458_v60, inf  ;;  %v1448_v22 = vsel %vm1447_vm11, %v1443_v0, inf  ;;  %v1585_v16 = vadd.s32 4294967264, %v2688_v21  ;;  %vm1625_vm10 = vcmask 654912  }
 0x261   :  { %1464 = vmin.xlane.f32.xlu1 %v1463_v12  ;;  %1449 = vmin.xlane.f32.xlu0 %v1448_v22  ;;  %v2934_v53 = vshll.u32 %v1467_v3, 16  ;;  %vm1632_vm11 = vcmask 720512  }
 0x262   :  { %v2886_v26 = vpop.xlane.xlu1 %1490  ;;  %v2888_v13 = vpop.xlane.xlu0 %1475 }
 0x263   :  { %vm1492_vm12 = vcmp.eq.f32.partialorder %v2802_v61, %v2886_v26  ;;  %vm1477_vm13 = vcmp.eq.f32.partialorder %v2798_v54, %v2888_v13  ;;  %v1497_v46 = vcvt.f32.s32 %v2886_v26 }
 0x264   :  { %v1493_v6 = vsel %vm1492_vm12, %v1488_v2, inf  ;;  %v1478_v10 = vsel %vm1477_vm13, %v1473_v63, inf  ;;  %v1453_v2 = vshll.u32 %v1452_v41, 16  ;;  %v1482_v63 = vcvt.f32.s32 %v2888_v13 }
 0x265   :  { %1494 = vmin.xlane.f32.xlu1 %v1493_v6  ;;  %1479 = vmin.xlane.f32.xlu0 %v1478_v10  ;;  %v2941_v45 = vshll.u32 %v1497_v46, 16  ;;  %vm1639_vm12 = vcmask 786112   ;;  %vm1646_vm13 = vcmask 851712  }
 0x266   :  { %v2896_v59 = vpop.xlane.xlu1 %1520  ;;  %v2898_v25 = vpop.xlane.xlu0 %1505 }
 0x267   :  { %vm1522_vm14 = vcmp.eq.f32.partialorder %v2817_v24, %v2896_v59  ;;  %vm1507_vm15 = vcmp.eq.f32.partialorder %v2819_v34, %v2898_v25  ;;  %v2915_v34 = vshrl.u32 %v1286_v8, 7  ;;  %v1348_v8 = vshll.u32 %v1347_v15, 16 }
 0x268   :  { %v1523_v54 = vsel %vm1522_vm14, %v1518_v39, inf  ;;  %v1508_v61 = vsel %vm1507_vm15, %v1503_v43, inf  ;;  %v1606_v39 = vadd.s32 4294967240, %v2688_v21  ;;  %vm1653_vm14 = vcmask 917312  }
 0x269   :  { %1524 = vmin.xlane.f32.xlu1 %v1523_v54  ;;  %1509 = vmin.xlane.f32.xlu0 %v1508_v61  ;;  %v1567_v36 = vsub.s32 %v1564_v50, %v2915_v34  ;;  %v1562_v14 = vsub.s32 %v2688_v21, %v2915_v34  ;;  %v1574_v60 = vsub.s32 %v1571_v55, %v2915_v34  ;;  %v1599_v54 = vadd.s32 4294967248, %v2688_v21 }
 0x26a   :  { %v2906_v4 = vpop.xlane.xlu1 %1550  ;;  %v2908_v40 = vpop.xlane.xlu0 %1535  ;;  %v1581_v30 = vsub.s32 %v1578_v27, %v2915_v34  ;;  %v1595_v43 = vsub.s32 %v1592_v29, %v2915_v34  ;;  %v1588_v13 = vsub.s32 %v1585_v16, %v2915_v34  ;;  %v1620_v50 = vadd.s32 4294967224, %v2688_v21 }
 0x26b   :  { %vm1552_vm0 = vcmp.eq.f32.partialorder %v2828_v38, %v2906_v4  ;;  %vm1537_vm2 = vcmp.eq.f32.partialorder %v2830_v57, %v2908_v40  ;;  %v1362_v38 = vcvt.f32.s32 %v2850_v56  ;;  %v1407_v57 = vcvt.f32.s32 %v2856_v17 }
 0x26c   :  { %v1553_v58 = vsel %vm1552_vm0, %v1548_v44, inf  ;;  %v1538_v24 = vsel %vm1537_vm2, %v1533_v11, inf  ;;  %v1623_v3 = vsub.s32 %v1620_v50, %v2915_v34  ;;  %vm1660_vm15 = vcmask 982912  }
 0x26d   :  { %1554 = vmin.xlane.f32.xlu1 %v1553_v58  ;;  %1539 = vmin.xlane.f32.xlu0 %v1538_v24  ;;  %v1363_v48 = vshll.u32 %v1362_v38, 16  ;;  %v1408_v17 = vshll.u32 %v1407_v57, 16  ;;  %v1483_v58 = vshll.u32 %v1482_v63, 16  ;;  %v1609_v38 = vsub.s32 %v1606_v39, %v2915_v34 }
 0x26e   :  { %v1641_v63 = vadd.s32 4294967200, %v2688_v21  ;;  %v1557_v39 = vcvt.f32.s32 %v2906_v4  ;;  %v1655_v4 = vadd.s32 4294967184, %v2688_v21  ;;  %vm1667_vm0 = vcmask 1048512  }
 0x2da   :  { %v1345_v62 = vpop.xlane.xlu1 %1344 }
 0x2db   :  { %v1346_v18 = vcvt.f32.s32 %v1345_v62 }
 0x2dd   :  { %v1349_v32 = vadd.s32 %v1348_v8, %v1346_v18  ;;  %v1602_v18 = vsub.s32 %v1599_v54, %v2915_v34  ;;  %v1662_v54 = vadd.s32 4294967176, %v2688_v21 }
 0x2de   :  { %v1375_v42 = vpop.xlane.xlu1 %1374  ;;  %v1330_v56 = vpop.xlane.xlu0 %1329 }
 0x2df   :  { %v1331_v37 = vcvt.f32.s32 %v1330_v56  ;;  %v1376_v1 = vcvt.f32.s32 %v1375_v42  ;;  %v1568_v49 = vrot.slane %v1349_v32, %v1567_v36  ;;  %v1613_v36 = vadd.s32 4294967232, %v2688_v21 }
 0x2e1   :  { %v1334_v33 = vadd.s32 %v1333_v51, %v1331_v37  ;;  %v1379_v26 = vadd.s32 %v1378_v20, %v1376_v1  ;;  %v1527_v51 = vcvt.f32.s32 %v2896_v59  ;;  %v1616_v37 = vsub.s32 %v1613_v36, %v2915_v34 }
 0x2e2   :  { %v1360_v0 = vpop.xlane.xlu0 %1359  ;;  %v1627_v59 = vadd.s32 4294967216, %v2688_v21 }
 0x2e3   :  { %v1563_v12 = vrot.slane %v1334_v33, %v1562_v14  ;;  %v1361_v22 = vcvt.f32.s32 %v1360_v0  ;;  %v1582_v24 = vrot.slane %v1379_v26, %v1581_v30  ;;  %v1528_v46 = vshll.u32 %v1527_v51, 16 }
 0x2e5   :  { %v1570_v6 = vsel %vm1569_vm1, %v1568_v49, %v1563_v12  ;;  %v1364_v10 = vadd.s32 %v1363_v48, %v1361_v22  ;;  %v1512_v48 = vcvt.f32.s32 %v2898_v25  ;;  %v1630_v22 = vsub.s32 %v1627_v59, %v2915_v34 }
 0x2e6   :  { %v1405_v7 = vpop.xlane.xlu1 %1404  ;;  %v1390_v52 = vpop.xlane.xlu0 %1389 }
 0x2e7   :  { %v1575_v61 = vrot.slane %v1364_v10, %v1574_v60  ;;  %v1406_v44 = vcvt.f32.s32 %v1405_v7  ;;  %v1391_v11 = vcvt.f32.s32 %v1390_v52  ;;  %v1513_v33 = vshll.u32 %v1512_v48, 16 }
 0x2e9   :  { %v1577_v15 = vsel %vm1576_vm3, %v1575_v61, %v1570_v6  ;;  %v1409_v35 = vadd.s32 %v1408_v17, %v1406_v44  ;;  %v1394_v23 = vadd.s32 %v1393_v31, %v1391_v11  ;;  %v1634_v17 = vadd.s32 4294967208, %v2688_v21 }
 0x2ea   :  { %v1584_v62 = vsel %vm1583_vm4, %v1582_v24, %v1577_v15  ;;  %v1435_v57 = vpop.xlane.xlu1 %1434  ;;  %v1420_v28 = vpop.xlane.xlu0 %1419 }
 0x2eb   :  { %v1596_v8 = vrot.slane %v1409_v35, %v1595_v43  ;;  %v1589_v20 = vrot.slane %v1394_v23, %v1588_v13  ;;  %v1436_v19 = vcvt.f32.s32 %v1435_v57  ;;  %v1421_v9 = vcvt.f32.s32 %v1420_v28 }
 0x2ec   :  { %v1637_v29 = vsub.s32 %v1634_v17, %v2915_v34  ;;  %v1644_v13 = vsub.s32 %v1641_v63, %v2915_v34  ;;  %v1558_v35 = vshll.u32 %v1557_v39, 16 }
 0x2ed   :  { %v1591_v42 = vsel %vm1590_vm5, %v1589_v20, %v1584_v62  ;;  %v1439_v56 = vadd.s32 %v1438_v47, %v1436_v19  ;;  %v1424_v55 = vadd.s32 %v1423_v5, %v1421_v9  ;;  %v1648_v47 = vadd.s32 4294967192, %v2688_v21 }
 0x2ee   :  { %v1598_v32 = vsel %vm1597_vm6, %v1596_v8, %v1591_v42  ;;  %v1465_v14 = vpop.xlane.xlu1 %1464  ;;  %v1450_v31 = vpop.xlane.xlu0 %1449  ;;  %v1665_v62 = vsub.s32 %v1662_v54, %v2915_v34 }
 0x2ef   :  { %v1610_v41 = vrot.slane %v1439_v56, %v1609_v38  ;;  %v1603_v25 = vrot.slane %v1424_v55, %v1602_v18  ;;  %v1466_v27 = vcvt.f32.s32 %v1465_v14  ;;  %v1451_v1 = vcvt.f32.s32 %v1450_v31 }
 0x2f0   :  { %v1658_v18 = vsub.s32 %v1655_v4, %v2915_v34 }
 0x2f1   :  { %v1605_v5 = vsel %vm1604_vm7, %v1603_v25, %v1598_v32  ;;  %v1469_v60 = vadd.s32 %v2934_v53, %v1466_v27  ;;  %v1454_v0 = vadd.s32 %v1453_v2, %v1451_v1  ;;  %v1542_v53 = vcvt.f32.s32 %v2908_v40 }
 0x2f2   :  { %v1612_v49 = vsel %vm1611_vm8, %v1610_v41, %v1605_v5  ;;  %v1495_v12 = vpop.xlane.xlu1 %1494  ;;  %v1480_v16 = vpop.xlane.xlu0 %1479  ;;  %v1651_v2 = vsub.s32 %v1648_v47, %v2915_v34 }
 0x2f3   :  { %v1624_v30 = vrot.slane %v1469_v60, %v1623_v3  ;;  %v1617_v26 = vrot.slane %v1454_v0, %v1616_v37  ;;  %v1496_v6 = vcvt.f32.s32 %v1495_v12  ;;  %v1481_v10 = vcvt.f32.s32 %v1480_v16 }
 0x2f4   :  { %v1543_v23 = vshll.u32 %v1542_v53, 16 }
 0x2f5   :  { %v1619_v43 = vsel %vm1618_vm9, %v1617_v26, %v1612_v49  ;;  %v1499_v7 = vadd.s32 %v2941_v45, %v1496_v6  ;;  %v1484_v52 = vadd.s32 %v1483_v58, %v1481_v10 }
 0x2f6   :  { %v1626_v61 = vsel %vm1625_vm10, %v1624_v30, %v1619_v43  ;;  %v1525_v44 = vpop.xlane.xlu1 %1524  ;;  %v1510_v11 = vpop.xlane.xlu0 %1509 }
 0x2f7   :  { %v1638_v40 = vrot.slane %v1499_v7, %v1637_v29  ;;  %v1631_v24 = vrot.slane %v1484_v52, %v1630_v22  ;;  %v1526_v50 = vcvt.f32.s32 %v1525_v44  ;;  %v1511_v15 = vcvt.f32.s32 %v1510_v11 }
 0x2f9   :  { %v1633_v45 = vsel %vm1632_vm11, %v1631_v24, %v1626_v61  ;;  %v1529_v58 = vadd.s32 %v1528_v46, %v1526_v50  ;;  %v1514_v38 = vadd.s32 %v1513_v33, %v1511_v15 }
 0x2fa   :  { %v1555_v57 = vpop.xlane.xlu1 %1554  ;;  %v1540_v28 = vpop.xlane.xlu0 %1539  ;;  %v1640_v36 = vsel %vm1639_vm12, %v1638_v40, %v1633_v45 }
 0x2fb   :  { %v1652_v21 = vrot.slane %v1529_v58, %v1651_v2  ;;  %v1645_v8 = vrot.slane %v1514_v38, %v1644_v13  ;;  %v1556_v20 = vcvt.f32.s32 %v1555_v57  ;;  %v1541_v19 = vcvt.f32.s32 %v1540_v28 }
 0x2fd   :  { %v1559_v9 = vadd.s32 %v1558_v35, %v1556_v20  ;;  %v1544_v51 = vadd.s32 %v1543_v23, %v1541_v19  ;;  %v1647_v48 = vsel %vm1646_vm13, %v1645_v8, %v1640_v36 }
 0x2fe   :  { %v1654_v3 = vsel %vm1653_vm14, %v1652_v21, %v1647_v48 }
 0x2ff   :  { %v1666_v42 = vrot.slane %v1559_v9, %v1665_v62  ;;  %v1659_v56 = vrot.slane %v1544_v51, %v1658_v18 }
 0x301   :  { %v1661_v55 = vsel %vm1660_vm15, %v1659_v56, %v1654_v3 }
 0x302   :  { %v1668_v34 = vsel %vm1667_vm0, %v1666_v42, %v1661_v55 }
 0x303   :  { %1669 = vst [vmem:[#allocation2] sm:$0x1] %v1668_v34 }
 0x304   :  { %2240 = shalt.err (!%p2237_p4)
}
 0x305   :  { %s2241_s14 = scalar_lea.hbm %s2993_s3, 16 }
 0x306   :  { %p2242_p5 = scmp.ne.s32.totalorder %s2993_s3, %s2241_s14  ;;  %p2245_p6 = scmp.lt.u32.totalorder %s2241_s14, %s2993_s3 }
 0x308   :  { %p2247_p7 = pnand %p2245_p6, %p2242_p5 }
 0x30a   :  { %2250 = shalt.err (!%p2247_p7)
}
 0x30b   :  { %1679 = dma.vmem_to_hbm [thread:$0]  %s1677_s9, 16, %s2993_s3, [#allocation3]  }
 0x30c   :  { %2251 = dma.done.wait [#allocation3], 16  }
 0x30d   :  { %2252 = vsyncadd [#allocation3], 4294967280 }
 0x30e   :  { %1683 = vsyncpa [#allocation3], 1 }

// kernel: tpu_custom_call.1
= control target key start
LH: loop header
LB: loop body
LE: loop exit
PB: predicated region body
PF: predicated region fallthrough
CT: control target
= control target key end

     0   :  { %vm57_vm0 = vcmask 261120   ;;  %vm1236_vm1 = vcmask 97280   ;;  %s2863_s1 = inlined_call_operand.vmem [shape: f32[32,12], index: 1, kind: input, shape index: {}]   ;;  %s2864_s0 = inlined_call_operand.vmem [shape: bf16[128,32], index: 0, kind: input, shape index: {}]   ;;  %s2865_s2 = inlined_call_operand.vmem [shape: f32[1,12], index: 2, kind: input, shape index: {}]   ;;  %s2866_s3 = inlined_call_operand.vmem [shape: s32[128,1], index: 3, kind: output, shape index: {}]  }
   0x1   :  { %v46_v0 = vld [vmem:[%s2863_s1] sm:$0xff]  ;;  %v47_v1 = vld [vmem:[%s2863_s1 + $0x8] sm:$0xff]  ;;  %v2153_v2 = vld [vmem:[%s2863_s1 + $0x10] sm:$0xff] }
   0x2   :  { %v107_v3 = vand.u32 4294901760, %v46_v0  ;;  %v110_v4 = vand.u32 4294901760, %v47_v1  ;;  %v2158_v5 = vld [vmem:[%s2863_s1 + $0x18] sm:$0xff]  ;;  %v113_v6 = vand.u32 4294901760, %v2153_v2  ;;  %v1630_v7 = vld [vmem:[%s2864_s0] sm:$0xff]   ;;  %v1661_v8 = vld [vmem:[%s2864_s0 + $0x8] sm:$0xff]  }
   0x3   :  { %v116_v9 = vand.u32 4294901760, %v2158_v5  ;;  %v2168_v10 = vunpack.c.l.bf16 %v1630_v7  ;;  %v2170_v11 = vunpack.c.h.bf16 %v1630_v7  ;;  %v2172_v12 = vunpack.c.l.bf16 %v1661_v8  ;;  %v1662_v17 = vld [vmem:[%s2864_s0 + $0x10] sm:$0xff]   ;;  %v1663_v42 = vld [vmem:[%s2864_s0 + $0x18] sm:$0xff]   ;;  %v1664_v47 = vld [vmem:[%s2864_s0 + $0x20] sm:$0xff]  }
   0x4   :  { %v2174_v13 = vpack.c.bf16 %v110_v4, %v107_v3  ;;  %v2176_v14 = vsub.f32 %v46_v0, %v107_v3  ;;  %v2178_v15 = vsub.f32 %v47_v1, %v110_v4  ;;  %v2180_v16 = vunpack.c.h.bf16 %v1661_v8  ;;  %v1665_v7 = vld [vmem:[%s2864_s0 + $0x28] sm:$0xff]  }
   0x5   :  { %v2189_v18 = vpack.c.bf16 %v116_v9, %v113_v6  ;;  %v59_v19 = vsel %vm57_vm0, %v2168_v10, 0  ;;  %v62_v20 = vsel %vm57_vm0, %v2170_v11, 0  ;;  %v65_v21 = vsel %vm57_vm0, %v2172_v12, 0 }
   0x6   :  { %1981 = vmatprep.subr.bf16.mxu1 %v2174_v13  ;;  %2005 = vmatprep.subr.bf16.mxu0 %v2174_v13  ;;  %v2199_v22 = vsub.f32 %v59_v19, %v59_v19  ;;  %v2201_v23 = vsub.f32 %v62_v20, %v62_v20  ;;  %v338_v24 = vand.u32 4294901760, %v2176_v14  ;;  %v345_v25 = vand.u32 4294901760, %v2178_v15 }
   0x7   :  { %1983 = vmatpush3.bf16.msra.mxu1 %v2174_v13  ;;  %2007 = vmatpush3.bf16.msra.mxu0 %v2174_v13  ;;  %v2207_v26 = vsub.f32 %v65_v21, %v65_v21  ;;  %v68_v27 = vsel %vm57_vm0, %v2180_v16, 0  ;;  %v2211_v28 = vunpack.c.l.bf16 %v1662_v17  ;;  %v2213_v29 = vunpack.c.h.bf16 %v1662_v17 }
   0x8   :  { %1985 = vmatprep.subr.bf16.mxu1 %v2189_v18  ;;  %2009 = vmatprep.subr.bf16.mxu0 %v2189_v18  ;;  %v177_v30 = vand.u32 4294901760, %v2199_v22  ;;  %v187_v31 = vand.u32 4294901760, %v2201_v23  ;;  %v339_v32 = vsub.f32 %v2176_v14, %v338_v24  ;;  %v346_v33 = vsub.f32 %v2178_v15, %v345_v25 }
   0x9   :  { %v2012_v34 = vpack.c.bf16 %v345_v25, %v338_v24  ;;  %v197_v35 = vand.u32 4294901760, %v2207_v26  ;;  %v2222_v36 = vsub.f32 %v68_v27, %v68_v27  ;;  %v71_v37 = vsel %vm57_vm0, %v2211_v28, 0 }
   0xa   :  { %v178_v38 = vsub.f32 %v2199_v22, %v177_v30  ;;  %1892 = vmatprep.mubr.f32.mxu0 %v177_v30  ;;  %v188_v39 = vsub.f32 %v2201_v23, %v187_v31  ;;  %v340_v40 = vand.u32 4294901760, %v339_v32  ;;  %v347_v41 = vand.u32 4294901760, %v346_v33 }
   0xb   :  { %1987 = vmatpush3.bf16.msra.mxu1 %v2189_v18  ;;  %2011 = vmatpush3.bf16.msra.mxu0 %v2189_v18  ;;  %v198_v43 = vsub.f32 %v2207_v26, %v197_v35  ;;  %v207_v44 = vand.u32 4294901760, %v2222_v36  ;;  %v2235_v45 = vsub.f32 %v71_v37, %v71_v37  ;;  %v74_v46 = vsel %vm57_vm0, %v2213_v29, 0 }
   0xc   :  { %v179_v48 = vand.u32 4294901760, %v178_v38  ;;  %v189_v49 = vand.u32 4294901760, %v188_v39  ;;  %v1988_v50 = vpack.c.bf16 %v347_v41, %v340_v40  ;;  %2013 = vmatprep.subr.bf16.mxu0 %v2012_v34  ;;  %v2242_v51 = vsub.f32 %v74_v46, %v74_v46 }
   0xd   :  { %v199_v52 = vand.u32 4294901760, %v198_v43  ;;  %v208_v53 = vsub.f32 %v2222_v36, %v207_v44  ;;  %v217_v54 = vand.u32 4294901760, %v2235_v45  ;;  %v2246_v55 = vunpack.c.l.bf16 %v1663_v42 }
   0xe   :  { %1796 = vmatprep.mubr.f32.mxu1 %v179_v48  ;;  %1989 = vmatprep.subr.bf16.mxu1 %v1988_v50  ;;  %v227_v56 = vand.u32 4294901760, %v2242_v51  ;;  %v2249_v57 = vunpack.c.h.bf16 %v1663_v42  ;;  %v2251_v58 = vunpack.c.l.bf16 %v1664_v47  ;;  %v2253_v59 = vunpack.c.h.bf16 %v1664_v47 }
   0xf   :  { %1797 = vmatmul.mubr.f32.vlgmr.msra.gmra.mrb[0].mxu1 %v189_v49  ;;  %1893 = vmatmul.mubr.f32.vlgmr.msra.gmra.mrb[0].mxu0 %v187_v31  ;;  %v209_v60 = vand.u32 4294901760, %v208_v53  ;;  %v218_v61 = vsub.f32 %v2235_v45, %v217_v54  ;;  %v77_v62 = vsel %vm57_vm0, %v2246_v55, 0  ;;  %v2261_v63 = vsub.f32 %v2153_v2, %v113_v6 }
  0x10   :  { %1991 = vmatpush3.bf16.msra.mxu1 %v1988_v50  ;;  %1799 = vmatprep.mubr.f32.mxu1 %v199_v52  ;;  %v228_v0 = vsub.f32 %v2242_v51, %v227_v56  ;;  %v2264_v1 = vsub.f32 %v77_v62, %v77_v62  ;;  %v80_v3 = vsel %vm57_vm0, %v2249_v57, 0  ;;  %v83_v4 = vsel %vm57_vm0, %v2251_v58, 0 }
  0x11   :  { %1895 = vmatprep.mubr.f32.mxu0 %v197_v35  ;;  %2015 = vmatpush3.bf16.msra.mxu0 %v2012_v34  ;;  %v219_v2 = vand.u32 4294901760, %v218_v61  ;;  %v2273_v6 = vsub.f32 %v80_v3, %v80_v3  ;;  %v2275_v8 = vsub.f32 %v83_v4, %v83_v4  ;;  %v86_v17 = vsel %vm57_vm0, %v2253_v59, 0 }
  0x12   :  { %v229_v19 = vand.u32 4294901760, %v228_v0  ;;  %v237_v20 = vand.u32 4294901760, %v2264_v1  ;;  %v2280_v21 = vsub.f32 %v86_v17, %v86_v17  ;;  %v352_v24 = vand.u32 4294901760, %v2261_v63 }
  0x13   :  { %1800 = vmatmul.mubr.f32.gmra.mrb[2].mxu1 %v209_v60  ;;  %1896 = vmatmul.mubr.f32.gmra.mrb[2].mxu0 %v207_v44  ;;  %v247_v25 = vand.u32 4294901760, %v2273_v6  ;;  %v257_v27 = vand.u32 4294901760, %v2275_v8  ;;  %v2288_v30 = vsub.f32 %v2158_v5, %v116_v9  ;;  %v2290_v31 = vunpack.c.l.bf16 %v1665_v7  ;;  %v1666_v9 = vld [vmem:[%s2864_s0 + $0x30] sm:$0xff]   ;;  %v1667_v44 = vld [vmem:[%s2864_s0 + $0x38] sm:$0xff]  }
  0x14   :  { %1802 = vmatprep.mubr.f32.mxu1 %v219_v2  ;;  %1898 = vmatprep.mubr.f32.mxu0 %v217_v54  ;;  %v238_v32 = vsub.f32 %v2264_v1, %v237_v20  ;;  %v267_v33 = vand.u32 4294901760, %v2280_v21  ;;  %v353_v34 = vsub.f32 %v2261_v63, %v352_v24  ;;  %v2295_v35 = vunpack.c.h.bf16 %v1665_v7 }
  0x15   :  { %v248_v37 = vsub.f32 %v2273_v6, %v247_v25  ;;  %v258_v38 = vsub.f32 %v2275_v8, %v257_v27  ;;  %v359_v39 = vand.u32 4294901760, %v2288_v30  ;;  %v89_v5 = vsel %vm57_vm0, %v2290_v31, 0 }
  0x16   :  { %v239_v40 = vand.u32 4294901760, %v238_v32  ;;  %v268_v41 = vsub.f32 %v2280_v21, %v267_v33  ;;  %v354_v42 = vand.u32 4294901760, %v353_v34  ;;  %v2306_v43 = vsub.f32 %v89_v5, %v89_v5 }
  0x17   :  { %1803 = vmatmul.mubr.f32.gmra.mrb[4].mxu1 %v229_v19  ;;  %1899 = vmatmul.mubr.f32.gmra.mrb[4].mxu0 %v227_v56  ;;  %v249_v46 = vand.u32 4294901760, %v248_v37  ;;  %v259_v47 = vand.u32 4294901760, %v258_v38  ;;  %v360_v48 = vsub.f32 %v2288_v30, %v359_v39  ;;  %v2016_v49 = vpack.c.bf16 %v359_v39, %v352_v24 }
  0x18   :  { %1805 = vmatprep.mubr.f32.mxu1 %v239_v40  ;;  %1901 = vmatprep.mubr.f32.mxu0 %v237_v20  ;;  %v269_v50 = vand.u32 4294901760, %v268_v41  ;;  %v277_v52 = vand.u32 4294901760, %v2306_v43  ;;  %v92_v53 = vsel %vm57_vm0, %v2295_v35, 0  ;;  %v2315_v54 = vunpack.c.l.bf16 %v1666_v9 }
  0x19   :  { %v361_v60 = vand.u32 4294901760, %v360_v48  ;;  %2017 = vmatprep.subr.bf16.mxu0 %v2016_v49  ;;  %v2317_v61 = vsub.f32 %v92_v53, %v92_v53  ;;  %v2319_v56 = vunpack.c.h.bf16 %v1666_v9  ;;  %v2321_v62 = vunpack.c.l.bf16 %v1667_v44 }
  0x1a   :  { %v278_v0 = vsub.f32 %v2306_v43, %v277_v52  ;;  %2019 = vmatpush3.bf16.msra.mxu0 %v2016_v49  ;;  %v95_v3 = vsel %vm57_vm0, %v2315_v54, 0  ;;  %v2326_v4 = vunpack.c.h.bf16 %v1667_v44  ;;  %v1996_v7 = vpack.c.bf16 %v2178_v15, %v2176_v14 }
  0x1b   :  { %1806 = vmatmul.mubr.f32.gmra.mrb[6].mxu1 %v249_v46  ;;  %1902 = vmatmul.mubr.f32.gmra.mrb[6].mxu0 %v247_v25  ;;  %v1992_v2 = vpack.c.bf16 %v361_v60, %v354_v42  ;;  %v287_v17 = vand.u32 4294901760, %v2317_v61  ;;  %v2331_v19 = vsub.f32 %v95_v3, %v95_v3  ;;  %v98_v20 = vsel %vm57_vm0, %v2319_v56, 0 }
  0x1c   :  { %1808 = vmatprep.mubr.f32.mxu1 %v259_v47  ;;  %1904 = vmatprep.mubr.f32.mxu0 %v257_v27  ;;  %v279_v24 = vand.u32 4294901760, %v278_v0  ;;  %v2335_v32 = vsub.f32 %v98_v20, %v98_v20  ;;  %v101_v34 = vsel %vm57_vm0, %v2321_v62, 0  ;;  %v104_v14 = vsel %vm57_vm0, %v2326_v4, 0 }
  0x1d   :  { %1993 = vmatprep.subr.bf16.mxu1 %v1992_v2  ;;  %v288_v15 = vsub.f32 %v2317_v61, %v287_v17  ;;  %v297_v25 = vand.u32 4294901760, %v2331_v19  ;;  %v2343_v37 = vsub.f32 %v101_v34, %v101_v34  ;;  %v2345_v38 = vsub.f32 %v104_v14, %v104_v14  ;;  %2021 = vmatprep.subr.bf16.mxu0 %v2174_v13 }
  0x1e   :  { %1995 = vmatpush3.bf16.msra.mxu1 %v1992_v2  ;;  %v307_v27 = vand.u32 4294901760, %v2335_v32  ;;  %v2000_v49 = vpack.c.bf16 %v2288_v30, %v2261_v63 }
  0x1f   :  { %1809 = vmatmul.mubr.f32.gmra.mrb[8].mxu1 %v269_v50  ;;  %1905 = vmatmul.mubr.f32.gmra.mrb[8].mxu0 %v267_v33  ;;  %v289_v39 = vand.u32 4294901760, %v288_v15  ;;  %v298_v5 = vsub.f32 %v2331_v19, %v297_v25  ;;  %v317_v9 = vand.u32 4294901760, %v2343_v37  ;;  %v327_v40 = vand.u32 4294901760, %v2345_v38 }
  0x20   :  { %1811 = vmatprep.mubr.f32.mxu1 %v279_v24  ;;  %1907 = vmatprep.mubr.f32.mxu0 %v277_v52  ;;  %v308_v41 = vsub.f32 %v2335_v32, %v307_v27 }
  0x21   :  { %v299_v42 = vand.u32 4294901760, %v298_v5  ;;  %v318_v44 = vsub.f32 %v2343_v37, %v317_v9  ;;  %1997 = vmatprep.subr.bf16.mxu1 %v1996_v7  ;;  %v328_v33 = vsub.f32 %v2345_v38, %v327_v40 }
  0x22   :  { %v309_v46 = vand.u32 4294901760, %v308_v41 }
  0x23   :  { %1812 = vmatmul.mubr.f32.gmra.mrb[10].mxu1 %v289_v39  ;;  %1908 = vmatmul.mubr.f32.gmra.mrb[10].mxu0 %v287_v17  ;;  %v319_v47 = vand.u32 4294901760, %v318_v44  ;;  %v329_v48 = vand.u32 4294901760, %v328_v33 }
  0x24   :  { %1814 = vmatprep.mubr.f32.mxu1 %v299_v42  ;;  %1910 = vmatprep.mubr.f32.mxu0 %v297_v25 }
  0x27   :  { %1815 = vmatmul.mubr.f32.gmra.mrb[12].mxu1 %v309_v46  ;;  %1911 = vmatmul.mubr.f32.gmra.mrb[12].mxu0 %v307_v27 }
  0x28   :  { %1817 = vmatprep.mubr.f32.mxu1 %v319_v47  ;;  %1913 = vmatprep.mubr.f32.mxu0 %v317_v9 }
  0x2b   :  { %1818 = vmatmul.mubr.f32.gmra.mrb[14].mxu1 %v329_v48  ;;  %1914 = vmatmul.mubr.f32.gmra.mrb[14].mxu0 %v327_v40 }
  0x2c   :  { %1828 = vmatprep.mubr.msk.f32.mxu1 %vm57_vm0, %v2168_v10  ;;  %1924 = vmatprep.mubr.msk.f32.mxu0 %vm57_vm0, %v2168_v10 }
  0x2f   :  { %1829 = vmatmul.mubr.msk.f32.vlgmr.msra.gmra.mrb[0].mxu1 %vm57_vm0, %v2170_v11  ;;  %1925 = vmatmul.mubr.msk.f32.vlgmr.msra.gmra.mrb[0].mxu0 %vm57_vm0, %v2170_v11 }
  0x30   :  { %1999 = vmatpush3.bf16.msra.mxu1 %v1996_v7  ;;  %1831 = vmatprep.mubr.msk.f32.mxu1 %vm57_vm0, %v2172_v12 }
  0x31   :  { %1927 = vmatprep.mubr.msk.f32.mxu0 %vm57_vm0, %v2172_v12  ;;  %2023 = vmatpush3.bf16.msra.mxu0 %v2174_v13 }
  0x32   :  { %2001 = vmatprep.subr.bf16.mxu1 %v2000_v49  ;;  %2025 = vmatprep.subr.bf16.mxu0 %v2189_v18 }
  0x33   :  { %1832 = vmatmul.mubr.msk.f32.gmra.mrb[2].mxu1 %vm57_vm0, %v2180_v16  ;;  %1928 = vmatmul.mubr.msk.f32.gmra.mrb[2].mxu0 %vm57_vm0, %v2180_v16 }
  0x34   :  { %1834 = vmatprep.mubr.msk.f32.mxu1 %vm57_vm0, %v2211_v28  ;;  %1930 = vmatprep.mubr.msk.f32.mxu0 %vm57_vm0, %v2211_v28 }
  0x35   :  { %2003 = vmatpush3.bf16.msra.mxu1 %v2000_v49  ;;  %2027 = vmatpush3.bf16.msra.mxu0 %v2189_v18 }
  0x37   :  { %1835 = vmatmul.mubr.msk.f32.gmra.mrb[4].mxu1 %vm57_vm0, %v2213_v29  ;;  %1931 = vmatmul.mubr.msk.f32.gmra.mrb[4].mxu0 %vm57_vm0, %v2213_v29 }
  0x38   :  { %1837 = vmatprep.mubr.msk.f32.mxu1 %vm57_vm0, %v2246_v55  ;;  %1933 = vmatprep.mubr.msk.f32.mxu0 %vm57_vm0, %v2246_v55 }
  0x3b   :  { %1838 = vmatmul.mubr.msk.f32.gmra.mrb[6].mxu1 %vm57_vm0, %v2249_v57  ;;  %1934 = vmatmul.mubr.msk.f32.gmra.mrb[6].mxu0 %vm57_vm0, %v2249_v57 }
  0x3c   :  { %1840 = vmatprep.mubr.msk.f32.mxu1 %vm57_vm0, %v2251_v58  ;;  %1936 = vmatprep.mubr.msk.f32.mxu0 %vm57_vm0, %v2251_v58 }
  0x3f   :  { %1841 = vmatmul.mubr.msk.f32.gmra.mrb[8].mxu1 %vm57_vm0, %v2253_v59  ;;  %1937 = vmatmul.mubr.msk.f32.gmra.mrb[8].mxu0 %vm57_vm0, %v2253_v59 }
  0x40   :  { %1843 = vmatprep.mubr.msk.f32.mxu1 %vm57_vm0, %v2290_v31  ;;  %1939 = vmatprep.mubr.msk.f32.mxu0 %vm57_vm0, %v2290_v31 }
  0x43   :  { %1844 = vmatmul.mubr.msk.f32.gmra.mrb[10].mxu1 %vm57_vm0, %v2295_v35  ;;  %1940 = vmatmul.mubr.msk.f32.gmra.mrb[10].mxu0 %vm57_vm0, %v2295_v35 }
  0x44   :  { %1846 = vmatprep.mubr.msk.f32.mxu1 %vm57_vm0, %v2315_v54  ;;  %1942 = vmatprep.mubr.msk.f32.mxu0 %vm57_vm0, %v2315_v54 }
  0x47   :  { %1847 = vmatmul.mubr.msk.f32.gmra.mrb[12].mxu1 %vm57_vm0, %v2319_v56  ;;  %1943 = vmatmul.mubr.msk.f32.gmra.mrb[12].mxu0 %vm57_vm0, %v2319_v56 }
  0x48   :  { %1849 = vmatprep.mubr.msk.f32.mxu1 %vm57_vm0, %v2321_v62  ;;  %1945 = vmatprep.mubr.msk.f32.mxu0 %vm57_vm0, %v2321_v62 }
  0x4b   :  { %1850 = vmatmul.mubr.msk.f32.gmra.mrb[14].mxu1 %vm57_vm0, %v2326_v4  ;;  %1946 = vmatmul.mubr.msk.f32.gmra.mrb[14].mxu0 %vm57_vm0, %v2326_v4 }
  0x4c   :  { %1860 = vmatprep.mubr.f32.mxu1 %v2199_v22  ;;  %1956 = vmatprep.mubr.msk.f32.mxu0 %vm57_vm0, %v2168_v10  ;;  %v2475_v10 = vld [vmem:[%s2865_s2] ss:$0 sm:$0xff] }
  0x4f   :  { %1861 = vmatmul.mubr.f32.vlgmr.msra.gmra.mrb[0].mxu1 %v2201_v23  ;;  %1957 = vmatmul.mubr.msk.f32.vlgmr.msra.gmra.mrb[0].mxu0 %vm57_vm0, %v2170_v11 }
  0x50   :  { %1863 = vmatprep.mubr.f32.mxu1 %v2207_v26  ;;  %1959 = vmatprep.mubr.msk.f32.mxu0 %vm57_vm0, %v2172_v12 }
  0x53   :  { %1864 = vmatmul.mubr.f32.gmra.mrb[2].mxu1 %v2222_v36  ;;  %1960 = vmatmul.mubr.msk.f32.gmra.mrb[2].mxu0 %vm57_vm0, %v2180_v16 }
  0x54   :  { %1866 = vmatprep.mubr.f32.mxu1 %v2235_v45  ;;  %1962 = vmatprep.mubr.msk.f32.mxu0 %vm57_vm0, %v2211_v28 }
  0x57   :  { %1867 = vmatmul.mubr.f32.gmra.mrb[4].mxu1 %v2242_v51  ;;  %1963 = vmatmul.mubr.msk.f32.gmra.mrb[4].mxu0 %vm57_vm0, %v2213_v29 }
  0x58   :  { %1869 = vmatprep.mubr.f32.mxu1 %v2264_v1  ;;  %1965 = vmatprep.mubr.msk.f32.mxu0 %vm57_vm0, %v2246_v55 }
  0x5b   :  { %1870 = vmatmul.mubr.f32.gmra.mrb[6].mxu1 %v2273_v6  ;;  %1966 = vmatmul.mubr.msk.f32.gmra.mrb[6].mxu0 %vm57_vm0, %v2249_v57 }
  0x5c   :  { %1872 = vmatprep.mubr.f32.mxu1 %v2275_v8  ;;  %1968 = vmatprep.mubr.msk.f32.mxu0 %vm57_vm0, %v2251_v58 }
  0x5f   :  { %1873 = vmatmul.mubr.f32.gmra.mrb[8].mxu1 %v2280_v21  ;;  %1969 = vmatmul.mubr.msk.f32.gmra.mrb[8].mxu0 %vm57_vm0, %v2253_v59 }
  0x60   :  { %1875 = vmatprep.mubr.f32.mxu1 %v2306_v43  ;;  %1971 = vmatprep.mubr.msk.f32.mxu0 %vm57_vm0, %v2290_v31 }
  0x63   :  { %1876 = vmatmul.mubr.f32.gmra.mrb[10].mxu1 %v2317_v61  ;;  %1972 = vmatmul.mubr.msk.f32.gmra.mrb[10].mxu0 %vm57_vm0, %v2295_v35 }
  0x64   :  { %1878 = vmatprep.mubr.f32.mxu1 %v2331_v19  ;;  %1974 = vmatprep.mubr.msk.f32.mxu0 %vm57_vm0, %v2315_v54 }
  0x67   :  { %1879 = vmatmul.mubr.f32.gmra.mrb[12].mxu1 %v2335_v32  ;;  %1975 = vmatmul.mubr.msk.f32.gmra.mrb[12].mxu0 %vm57_vm0, %v2319_v56 }
  0x68   :  { %1881 = vmatprep.mubr.f32.mxu1 %v2343_v37  ;;  %1977 = vmatprep.mubr.msk.f32.mxu0 %vm57_vm0, %v2321_v62 }
  0x6b   :  { %1882 = vmatmul.mubr.f32.gmra.mrb[14].mxu1 %v2345_v38  ;;  %1978 = vmatmul.mubr.msk.f32.gmra.mrb[14].mxu0 %vm57_vm0, %v2326_v4 }
 0x122   :  { %v1862_v11 = vpop.f32.mrb[0].mxu1  ;;  %v1958_v12 = vpop.f32.mrb[0].mxu0 }
 0x123   :  { %v2028_v13 = vadd.f32 %v1862_v11, %v2475_v10  ;;  %v592_v16 = vpop.f32.mrb[1].mxu1  ;;  %v1142_v18 = vpop.f32.mrb[1].mxu0 }
 0x124   :  { %v2030_v22 = vadd.f32 %v2475_v10, %v592_v16 }
 0x125   :  { %v2479_v23 = vadd.f32 %v2028_v13, %v1958_v12 }
 0x126   :  { %v2481_v26 = vadd.f32 %v2030_v22, %v1142_v18  ;;  %v1865_v28 = vpop.f32.mrb[2].mxu1  ;;  %v1961_v29 = vpop.f32.mrb[2].mxu0 }
 0x127   :  { %v2032_v36 = vadd.f32 %v1865_v28, %v2475_v10  ;;  %v606_v45 = vpop.f32.mrb[3].mxu1  ;;  %v1154_v51 = vpop.f32.mrb[3].mxu0  ;;  %v1240_v55 = vsel %vm1236_vm1, %v2479_v23, -inf }
 0x128   :  { %v2034_v57 = vadd.f32 %v2475_v10, %v606_v45  ;;  %1241 = vmax.xlane.f32.xlu0 %v1240_v55  ;;  %v1237_v30 = vsel %vm1236_vm1, %v2481_v26, -inf }
 0x129   :  { %v2487_v58 = vadd.f32 %v2032_v36, %v1961_v29 }
 0x12a   :  { %v2489_v59 = vadd.f32 %v2034_v57, %v1154_v51  ;;  %v1868_v63 = vpop.f32.mrb[4].mxu1  ;;  %v1964_v1 = vpop.f32.mrb[4].mxu0 }
 0x12b   :  { %v2036_v6 = vadd.f32 %v1868_v63, %v2475_v10  ;;  %v620_v8 = vpop.f32.mrb[5].mxu1  ;;  %v1166_v21 = vpop.f32.mrb[5].mxu0  ;;  %v1246_v31 = vsel %vm1236_vm1, %v2487_v58, -inf }
 0x12c   :  { %v2038_v35 = vadd.f32 %v2475_v10, %v620_v8  ;;  %1238 = vmax.xlane.f32.xlu0 %v1237_v30  ;;  %1247 = vmax.xlane.f32.xlu1 %v1246_v31  ;;  %v1243_v56 = vsel %vm1236_vm1, %v2489_v59, -inf  ;;  %v1285_v8 = vlaneseq }
 0x12d   :  { %v2497_v43 = vadd.f32 %v2036_v6, %v1964_v1 }
 0x12e   :  { %v2499_v50 = vadd.f32 %v2038_v35, %v1166_v21  ;;  %v1871_v52 = vpop.f32.mrb[6].mxu1  ;;  %v1967_v53 = vpop.f32.mrb[6].mxu0  ;;  %v2557_v21 = vand.u32 127, %v1285_v8 }
 0x12f   :  { %v2040_v54 = vadd.f32 %v1871_v52, %v2475_v10  ;;  %v634_v60 = vpop.f32.mrb[7].mxu1  ;;  %v1178_v61 = vpop.f32.mrb[7].mxu0  ;;  %v1252_v24 = vsel %vm1236_vm1, %v2497_v43, -inf }
 0x130   :  { %v2042_v62 = vadd.f32 %v2475_v10, %v634_v60  ;;  %1244 = vmax.xlane.f32.xlu1 %v1243_v56  ;;  %v1249_v0 = vsel %vm1236_vm1, %v2499_v50, -inf }
 0x131   :  { %v2507_v3 = vadd.f32 %v2040_v54, %v1967_v53  ;;  %1250 = vmax.xlane.f32.xlu0 %v1249_v0 }
 0x132   :  { %v2509_v4 = vadd.f32 %v2042_v62, %v1178_v61  ;;  %v1874_v7 = vpop.f32.mrb[8].mxu1  ;;  %v1970_v2 = vpop.f32.mrb[8].mxu0 }
 0x133   :  { %v2044_v17 = vadd.f32 %v1874_v7, %v2475_v10  ;;  %v648_v19 = vpop.f32.mrb[9].mxu1  ;;  %v1190_v20 = vpop.f32.mrb[9].mxu0  ;;  %v1258_v5 = vsel %vm1236_vm1, %v2507_v3, -inf }
 0x134   :  { %v2046_v32 = vadd.f32 %v2475_v10, %v648_v19  ;;  %1253 = vmax.xlane.f32.xlu1 %v1252_v24  ;;  %v1255_v34 = vsel %vm1236_vm1, %v2509_v4, -inf }
 0x135   :  { %v2517_v14 = vadd.f32 %v2044_v17, %v1970_v2  ;;  %1256 = vmax.xlane.f32.xlu0 %v1255_v34 }
 0x136   :  { %v2519_v15 = vadd.f32 %v2046_v32, %v1190_v20  ;;  %v1877_v25 = vpop.f32.mrb[10].mxu1  ;;  %v1973_v37 = vpop.f32.mrb[10].mxu0 }
 0x137   :  { %v2048_v38 = vadd.f32 %v1877_v25, %v2475_v10  ;;  %v662_v27 = vpop.f32.mrb[11].mxu1  ;;  %v1202_v39 = vpop.f32.mrb[11].mxu0  ;;  %v1264_v49 = vsel %vm1236_vm1, %v2517_v14, -inf }
 0x138   :  { %v2050_v9 = vadd.f32 %v2475_v10, %v662_v27  ;;  %1259 = vmax.xlane.f32.xlu1 %v1258_v5  ;;  %v1261_v40 = vsel %vm1236_vm1, %v2519_v15, -inf }
 0x139   :  { %v2527_v41 = vadd.f32 %v2048_v38, %v1973_v37  ;;  %1262 = vmax.xlane.f32.xlu0 %v1261_v40 }
 0x13a   :  { %v2529_v42 = vadd.f32 %v2050_v9, %v1202_v39  ;;  %v1880_v44 = vpop.f32.mrb[12].mxu1  ;;  %v1976_v46 = vpop.f32.mrb[12].mxu0 }
 0x13b   :  { %v2052_v33 = vadd.f32 %v1880_v44, %v2475_v10  ;;  %v676_v47 = vpop.f32.mrb[13].mxu1  ;;  %v1214_v48 = vpop.f32.mrb[13].mxu0  ;;  %v1270_v45 = vsel %vm1236_vm1, %v2527_v41, -inf }
 0x13c   :  { %v2054_v11 = vadd.f32 %v2475_v10, %v676_v47  ;;  %1265 = vmax.xlane.f32.xlu1 %v1264_v49  ;;  %v1267_v12 = vsel %vm1236_vm1, %v2529_v42, -inf }
 0x13d   :  { %v2537_v13 = vadd.f32 %v2052_v33, %v1976_v46  ;;  %1268 = vmax.xlane.f32.xlu0 %v1267_v12 }
 0x13e   :  { %v2539_v16 = vadd.f32 %v2054_v11, %v1214_v48  ;;  %v1883_v18 = vpop.f32.mrb[14].mxu1  ;;  %v1979_v22 = vpop.f32.mrb[14].mxu0 }
 0x13f   :  { %v2056_v28 = vadd.f32 %v1883_v18, %v2475_v10  ;;  %v690_v29 = vpop.f32.mrb[15].mxu1  ;;  %v1226_v36 = vpop.f32.mrb[15].mxu0  ;;  %v1276_v1 = vsel %vm1236_vm1, %v2537_v13, -inf }
 0x140   :  { %v2058_v51 = vadd.f32 %v2475_v10, %v690_v29  ;;  %1271 = vmax.xlane.f32.xlu1 %v1270_v45  ;;  %v1273_v55 = vsel %vm1236_vm1, %v2539_v16, -inf }
 0x141   :  { %v2547_v57 = vadd.f32 %v2056_v28, %v1979_v22  ;;  %1274 = vmax.xlane.f32.xlu0 %v1273_v55 }
 0x142   :  { %v2549_v63 = vadd.f32 %v2058_v51, %v1226_v36 }
 0x143   :  { %v1282_v10 = vsel %vm1236_vm1, %v2547_v57, -inf }
 0x144   :  { %1277 = vmax.xlane.f32.xlu1 %v1276_v1  ;;  %v1279_v6 = vsel %vm1236_vm1, %v2549_v63, -inf }
 0x145   :  { %1280 = vmax.xlane.f32.xlu0 %v1279_v6 }
 0x148   :  { %1283 = vmax.xlane.f32.xlu1 %v1282_v10 }
 0x1b5   :  { %v1242_v30 = vpop.xlane.xlu0 %1241 }
 0x1b6   :  { %vm1288_vm2 = vcmp.eq.f32.partialorder %v2479_v23, %v1242_v30 }
 0x1b7   :  { %v1304_v31 = vsel %vm1288_vm2, %v2557_v21, 12 }
 0x1b8   :  { %v2562_v35 = vsel %vm1236_vm1, %v1304_v31, 2147483647 }
 0x1b9   :  { %v1239_v52 = vpop.xlane.xlu0 %1238  ;;  %v1248_v53 = vpop.xlane.xlu1 %1247  ;;  %v1336_v54 = vshra.s32 %v2562_v35, 16 }
 0x1ba   :  { %vm1287_vm3 = vcmp.eq.f32.partialorder %v2481_v26, %v1239_v52  ;;  %vm1290_vm4 = vcmp.eq.f32.partialorder %v2487_v58, %v1248_v53 }
 0x1bb   :  { %v1303_v60 = vsel %vm1287_vm3, %v2557_v21, 12  ;;  %v1306_v61 = vsel %vm1290_vm4, %v2557_v21, 12  ;;  %v2569_v56 = vcvt.s32.f32 %v1336_v54 }
 0x1bc   :  { %v2572_v23 = vsel %vm1236_vm1, %v1303_v60, 2147483647  ;;  %v2575_v62 = vsel %vm1236_vm1, %v1306_v61, 2147483647 }
 0x1bd   :  { %v1245_v0 = vpop.xlane.xlu1 %1244  ;;  %1339 = vmin.xlane.f32.xlu1 %v2569_v56  ;;  %v1366_v7 = vshra.s32 %v2575_v62, 16  ;;  %v1321_v26 = vshra.s32 %v2572_v23, 16 }
 0x1be   :  { %vm1289_vm5 = vcmp.eq.f32.partialorder %v2489_v59, %v1245_v0  ;;  %v1251_v58 = vpop.xlane.xlu0 %1250 }
 0x1bf   :  { %v1305_v2 = vsel %vm1289_vm5, %v2557_v21, 12  ;;  %vm1291_vm6 = vcmp.eq.f32.partialorder %v2499_v50, %v1251_v58  ;;  %v2583_v17 = vcvt.s32.f32 %v1366_v7  ;;  %v2585_v19 = vcvt.s32.f32 %v1321_v26 }
 0x1c0   :  { %v2588_v20 = vsel %vm1236_vm1, %v1305_v2, 2147483647  ;;  %v1307_v24 = vsel %vm1291_vm6, %v2557_v21, 12 }
 0x1c1   :  { %v2592_v32 = vsel %vm1236_vm1, %v1307_v24, 2147483647  ;;  %v1254_v34 = vpop.xlane.xlu1 %1253  ;;  %1369 = vmin.xlane.f32.xlu1 %v2583_v17  ;;  %1324 = vmin.xlane.f32.xlu0 %v2585_v19  ;;  %v1351_v59 = vshra.s32 %v2588_v20, 16 }
 0x1c2   :  { %vm1292_vm7 = vcmp.eq.f32.partialorder %v2497_v43, %v1254_v34  ;;  %v1257_v50 = vpop.xlane.xlu0 %1256  ;;  %v1381_v38 = vshra.s32 %v2592_v32, 16 }
 0x1c3   :  { %v1308_v25 = vsel %vm1292_vm7, %v2557_v21, 12  ;;  %vm1293_vm8 = vcmp.eq.f32.partialorder %v2509_v4, %v1257_v50  ;;  %v2600_v37 = vcvt.s32.f32 %v1351_v59 }
 0x1c4   :  { %v2604_v27 = vsel %vm1236_vm1, %v1308_v25, 2147483647  ;;  %v1309_v39 = vsel %vm1293_vm8, %v2557_v21, 12  ;;  %v2618_v33 = vcvt.s32.f32 %v1381_v38 }
 0x1c5   :  { %v2608_v5 = vsel %vm1236_vm1, %v1309_v39, 2147483647  ;;  %v1260_v9 = vpop.xlane.xlu1 %1259  ;;  %1354 = vmin.xlane.f32.xlu0 %v2600_v37  ;;  %v1396_v43 = vshra.s32 %v2604_v27, 16 }
 0x1c6   :  { %vm1294_vm9 = vcmp.eq.f32.partialorder %v2507_v3, %v1260_v9  ;;  %v1263_v4 = vpop.xlane.xlu0 %1262  ;;  %v1411_v40 = vshra.s32 %v2608_v5, 16  ;;  %v1365_v9 = vand.u32 65535, %v2575_v62 }
 0x1c7   :  { %v1310_v44 = vsel %vm1294_vm9, %v2557_v21, 12  ;;  %vm1295_vm10 = vcmp.eq.f32.partialorder %v2519_v15, %v1263_v4  ;;  %v2616_v46 = vcvt.s32.f32 %v1396_v43  ;;  %v1320_v43 = vand.u32 65535, %v2572_v23 }
 0x1c8   :  { %v2621_v47 = vsel %vm1236_vm1, %v1310_v44, 2147483647  ;;  %v1311_v48 = vsel %vm1295_vm10, %v2557_v21, 12  ;;  %v2631_v12 = vcvt.s32.f32 %v1411_v40 }
 0x1c9   :  { %v2625_v49 = vsel %vm1236_vm1, %v1311_v48, 2147483647  ;;  %v1266_v3 = vpop.xlane.xlu1 %1265  ;;  %1399 = vmin.xlane.f32.xlu1 %v2616_v46  ;;  %1384 = vmin.xlane.f32.xlu0 %v2618_v33  ;;  %v1426_v11 = vshra.s32 %v2621_v47, 16  ;;  %v1367_v48 = vcvt.s32.f32 %v1365_v9 }
 0x1ca   :  { %vm1296_vm11 = vcmp.eq.f32.partialorder %v2517_v14, %v1266_v3  ;;  %v1269_v15 = vpop.xlane.xlu0 %1268  ;;  %v1441_v28 = vshra.s32 %v2625_v49, 16  ;;  %v1322_v3 = vcvt.s32.f32 %v1320_v43 }
 0x1cb   :  { %v1312_v18 = vsel %vm1296_vm11, %v2557_v21, 12  ;;  %vm1297_vm12 = vcmp.eq.f32.partialorder %v2529_v42, %v1269_v15  ;;  %v2635_v22 = vcvt.s32.f32 %v1426_v11  ;;  %v1395_v15 = vand.u32 65535, %v2604_v27 }
 0x1cc   :  { %v2639_v29 = vsel %vm1236_vm1, %v1312_v18, 2147483647  ;;  %v1313_v36 = vsel %vm1297_vm12, %v2557_v21, 12  ;;  %v2654_v10 = vcvt.s32.f32 %v1441_v28  ;;  %v1380_v18 = vand.u32 65535, %v2592_v32 }
 0x1cd   :  { %v2643_v45 = vsel %vm1236_vm1, %v1313_v36, 2147483647  ;;  %v1272_v14 = vpop.xlane.xlu1 %1271  ;;  %1429 = vmin.xlane.f32.xlu1 %v2635_v22  ;;  %1414 = vmin.xlane.f32.xlu0 %v2631_v12  ;;  %v1456_v51 = vshra.s32 %v2639_v29, 16 }
 0x1ce   :  { %vm1298_vm13 = vcmp.eq.f32.partialorder %v2527_v41, %v1272_v14  ;;  %v1275_v42 = vpop.xlane.xlu0 %1274  ;;  %v1471_v55 = vshra.s32 %v2643_v45, 16  ;;  %v1382_v36 = vcvt.s32.f32 %v1380_v18  ;;  %v1425_v14 = vand.u32 65535, %v2621_v47 }
 0x1cf   :  { %v1314_v1 = vsel %vm1298_vm13, %v2557_v21, 12  ;;  %vm1299_vm14 = vcmp.eq.f32.partialorder %v2539_v16, %v1275_v42  ;;  %v2652_v6 = vcvt.s32.f32 %v1456_v51  ;;  %v1410_v51 = vand.u32 65535, %v2608_v5 }
 0x1d0   :  { %v2657_v8 = vsel %vm1236_vm1, %v1314_v1, 2147483647  ;;  %v1315_v30 = vsel %vm1299_vm14, %v2557_v21, 12  ;;  %v2667_v53 = vcvt.s32.f32 %v1471_v55  ;;  %v1427_v55 = vcvt.s32.f32 %v1425_v14 }
 0x1d1   :  { %v2661_v31 = vsel %vm1236_vm1, %v1315_v30, 2147483647  ;;  %v1278_v41 = vpop.xlane.xlu1 %1277  ;;  %1459 = vmin.xlane.f32.xlu1 %v2652_v6  ;;  %1444 = vmin.xlane.f32.xlu0 %v2654_v10  ;;  %v1486_v52 = vshra.s32 %v2657_v8, 16  ;;  %v1412_v1 = vcvt.s32.f32 %v1410_v51  ;;  %v1455_v47 = vand.u32 65535, %v2639_v29 }
 0x1d2   :  { %vm1300_vm15 = vcmp.eq.f32.partialorder %v2537_v13, %v1278_v41  ;;  %v1281_v16 = vpop.xlane.xlu0 %1280  ;;  %v1501_v61 = vshra.s32 %v2661_v31, 16  ;;  %v1440_v5 = vand.u32 65535, %v2625_v49  ;;  %v1485_v29 = vand.u32 65535, %v2657_v8 }
 0x1d3   :  { %v1316_v54 = vsel %vm1300_vm15, %v2557_v21, 12  ;;  %vm1301_vm0 = vcmp.eq.f32.partialorder %v2549_v63, %v1281_v16  ;;  %v2671_v60 = vcvt.s32.f32 %v1486_v52  ;;  %v1457_v52 = vcvt.s32.f32 %v1455_v47 }
 0x1d4   :  { %v2675_v0 = vsel %vm1236_vm1, %v1316_v54, 2147483647  ;;  %v1317_v7 = vsel %vm1301_vm0, %v2557_v21, 12  ;;  %v2688_v24 = vcvt.s32.f32 %v1501_v61  ;;  %v1442_v16 = vcvt.s32.f32 %v1440_v5 }
 0x1d5   :  { %v2679_v26 = vsel %vm1236_vm1, %v1317_v7, 2147483647  ;;  %1489 = vmin.xlane.f32.xlu1 %v2671_v60  ;;  %v1284_v13 = vpop.xlane.xlu1 %1283  ;;  %1474 = vmin.xlane.f32.xlu0 %v2667_v53  ;;  %v1516_v58 = vshra.s32 %v2675_v0, 16  ;;  %v1470_v49 = vand.u32 65535, %v2643_v45  ;;  %v1487_v7 = vcvt.s32.f32 %v1485_v29 }
 0x1d6   :  { %vm1302_vm2 = vcmp.eq.f32.partialorder %v2547_v57, %v1284_v13  ;;  %v1531_v34 = vshra.s32 %v2679_v26, 16  ;;  %v1515_v8 = vand.u32 65535, %v2675_v0  ;;  %v1500_v45 = vand.u32 65535, %v2661_v31 }
 0x1d7   :  { %v1318_v63 = vsel %vm1302_vm2, %v2557_v21, 12  ;;  %v2686_v2 = vcvt.s32.f32 %v1516_v58  ;;  %v1335_v21 = vand.u32 65535, %v2562_v35  ;;  %v1350_v35 = vand.u32 65535, %v2588_v20 }
 0x1d8   :  { %v2692_v59 = vsel %vm1236_vm1, %v1318_v63, 2147483647  ;;  %v2699_v57 = vcvt.s32.f32 %v1531_v34  ;;  %v1472_v13 = vcvt.s32.f32 %v1470_v49  ;;  %v1517_v34 = vcvt.s32.f32 %v1515_v8 }
 0x1d9   :  { %1519 = vmin.xlane.f32.xlu1 %v2686_v2  ;;  %1504 = vmin.xlane.f32.xlu0 %v2688_v24  ;;  %v1546_v50 = vshra.s32 %v2692_v59, 16  ;;  %v1337_v39 = vcvt.s32.f32 %v1335_v21  ;;  %v1352_v11 = vcvt.s32.f32 %v1350_v35  ;;  %v1545_v0 = vand.u32 65535, %v2692_v59 }
 0x1da   :  { %v1530_v31 = vand.u32 65535, %v2679_v26 }
 0x1db   :  { %v2697_v25 = vcvt.s32.f32 %v1546_v50  ;;  %v1502_v50 = vcvt.s32.f32 %v1500_v45  ;;  %v1547_v9 = vcvt.s32.f32 %v1545_v0 }
 0x1dc   :  { %v1532_v43 = vcvt.s32.f32 %v1530_v31 }
 0x1dd   :  { %1549 = vmin.xlane.f32.xlu1 %v2697_v25  ;;  %1534 = vmin.xlane.f32.xlu0 %v2699_v57 }
 0x24a   :  { %v2704_v38 = vpop.xlane.xlu1 %1339 }
 0x24b   :  { %vm1341_vm1 = vcmp.eq.f32.partialorder %v2569_v56, %v2704_v38 }
 0x24c   :  { %v1342_v4 = vsel %vm1341_vm1, %v1337_v39, inf  ;;  %vm1559_vm1 = vcmask 7168  }
 0x24d   :  { %1343 = vmin.xlane.f32.xlu1 %v1342_v4 }
 0x24e   :  { %v2710_v40 = vpop.xlane.xlu1 %1369  ;;  %v2712_v44 = vpop.xlane.xlu0 %1324 }
 0x24f   :  { %vm1371_vm3 = vcmp.eq.f32.partialorder %v2583_v17, %v2710_v40  ;;  %vm1326_vm4 = vcmp.eq.f32.partialorder %v2585_v19, %v2712_v44  ;;  %v1397_v19 = vcvt.s32.f32 %v1395_v15  ;;  %v1376_v59 = vcvt.f32.s32 %v2710_v40 }
 0x250   :  { %v1372_v23 = vsel %vm1371_vm3, %v1367_v48, inf  ;;  %v1327_v62 = vsel %vm1326_vm4, %v1322_v3, inf  ;;  %v1331_v3 = vcvt.f32.s32 %v2712_v44 }
 0x251   :  { %1373 = vmin.xlane.f32.xlu1 %v1372_v23  ;;  %1328 = vmin.xlane.f32.xlu0 %v1327_v62  ;;  %v1377_v62 = vshll.u32 %v1376_v59, 16 }
 0x252   :  { %v2719_v56 = vpop.xlane.xlu0 %1354  ;;  %v1332_v15 = vshll.u32 %v1331_v3, 16 }
 0x253   :  { %vm1356_vm5 = vcmp.eq.f32.partialorder %v2600_v37, %v2719_v56 }
 0x254   :  { %v1357_v20 = vsel %vm1356_vm5, %v1352_v11, inf }
 0x255   :  { %1358 = vmin.xlane.f32.xlu0 %v1357_v20 }
 0x256   :  { %v2725_v17 = vpop.xlane.xlu1 %1399  ;;  %v2727_v28 = vpop.xlane.xlu0 %1384 }
 0x257   :  { %vm1401_vm6 = vcmp.eq.f32.partialorder %v2616_v46, %v2725_v17  ;;  %vm1386_vm7 = vcmp.eq.f32.partialorder %v2618_v33, %v2727_v28  ;;  %v1406_v44 = vcvt.f32.s32 %v2725_v17 }
 0x258   :  { %v1402_v32 = vsel %vm1401_vm6, %v1397_v19, inf  ;;  %v1387_v37 = vsel %vm1386_vm7, %v1382_v36, inf  ;;  %v1391_v19 = vcvt.f32.s32 %v2727_v28 }
 0x259   :  { %1403 = vmin.xlane.f32.xlu1 %v1402_v32  ;;  %1388 = vmin.xlane.f32.xlu0 %v1387_v37  ;;  %v1407_v32 = vshll.u32 %v1406_v44, 16 }
 0x25a   :  { %v2735_v27 = vpop.xlane.xlu1 %1429  ;;  %v2737_v42 = vpop.xlane.xlu0 %1414  ;;  %v1392_v37 = vshll.u32 %v1391_v19, 16 }
 0x25b   :  { %vm1431_vm8 = vcmp.eq.f32.partialorder %v2635_v22, %v2735_v27  ;;  %vm1416_vm9 = vcmp.eq.f32.partialorder %v2631_v12, %v2737_v42  ;;  %v1436_v28 = vcvt.f32.s32 %v2735_v27 }
 0x25c   :  { %v1432_v46 = vsel %vm1431_vm8, %v1427_v55, inf  ;;  %v1417_v33 = vsel %vm1416_vm9, %v1412_v1, inf  ;;  %v1421_v1 = vcvt.f32.s32 %v2737_v42 }
 0x25d   :  { %1433 = vmin.xlane.f32.xlu1 %v1432_v46  ;;  %1418 = vmin.xlane.f32.xlu0 %v1417_v33 }
 0x25e   :  { %v2745_v30 = vpop.xlane.xlu1 %1459  ;;  %v2747_v41 = vpop.xlane.xlu0 %1444 }
 0x25f   :  { %vm1461_vm10 = vcmp.eq.f32.partialorder %v2652_v6, %v2745_v30  ;;  %vm1446_vm11 = vcmp.eq.f32.partialorder %v2654_v10, %v2747_v41 }
 0x260   :  { %v1462_v12 = vsel %vm1461_vm10, %v1457_v52, inf  ;;  %v1447_v22 = vsel %vm1446_vm11, %v1442_v16, inf  ;;  %v1466_v52 = vcvt.f32.s32 %v2745_v30  ;;  %v1451_v16 = vcvt.f32.s32 %v2747_v41 }
 0x261   :  { %1463 = vmin.xlane.f32.xlu1 %v1462_v12  ;;  %1448 = vmin.xlane.f32.xlu0 %v1447_v22  ;;  %v1437_v12 = vshll.u32 %v1436_v28, 16  ;;  %v1422_v22 = vshll.u32 %v1421_v1, 16 }
 0x262   :  { %v2755_v54 = vpop.xlane.xlu1 %1489  ;;  %v2757_v61 = vpop.xlane.xlu0 %1474  ;;  %v1452_v41 = vshll.u32 %v1451_v16, 16 }
 0x263   :  { %vm1491_vm12 = vcmp.eq.f32.partialorder %v2671_v60, %v2755_v54  ;;  %vm1476_vm13 = vcmp.eq.f32.partialorder %v2667_v53, %v2757_v61 }
 0x264   :  { %v1492_v6 = vsel %vm1491_vm12, %v1487_v7, inf  ;;  %v1477_v10 = vsel %vm1476_vm13, %v1472_v13, inf  ;;  %v1467_v13 = vshll.u32 %v1466_v52, 16 }
 0x265   :  { %1493 = vmin.xlane.f32.xlu1 %v1492_v6  ;;  %1478 = vmin.xlane.f32.xlu0 %v1477_v10  ;;  %v1496_v6 = vcvt.f32.s32 %v2755_v54  ;;  %v1481_v10 = vcvt.f32.s32 %v2757_v61 }
 0x266   :  { %v2765_v58 = vpop.xlane.xlu1 %1519  ;;  %v2767_v63 = vpop.xlane.xlu0 %1504 }
 0x267   :  { %vm1521_vm14 = vcmp.eq.f32.partialorder %v2686_v2, %v2765_v58  ;;  %vm1506_vm15 = vcmp.eq.f32.partialorder %v2688_v24, %v2767_v63  ;;  %v1346_v24 = vcvt.f32.s32 %v2704_v38  ;;  %v1511_v54 = vcvt.f32.s32 %v2767_v63 }
 0x268   :  { %v1522_v53 = vsel %vm1521_vm14, %v1517_v34, inf  ;;  %v1507_v60 = vsel %vm1506_vm15, %v1502_v50, inf }
 0x269   :  { %1523 = vmin.xlane.f32.xlu1 %v1522_v53  ;;  %1508 = vmin.xlane.f32.xlu0 %v1507_v60  ;;  %v1347_v48 = vshll.u32 %v1346_v24, 16  ;;  %v1526_v53 = vcvt.f32.s32 %v2765_v58  ;;  %v1512_v63 = vshll.u32 %v1511_v54, 16 }
 0x26a   :  { %v2775_v21 = vpop.xlane.xlu1 %1549  ;;  %v2777_v39 = vpop.xlane.xlu0 %1534 }
 0x26b   :  { %vm1551_vm0 = vcmp.eq.f32.partialorder %v2697_v25, %v2775_v21  ;;  %vm1536_vm2 = vcmp.eq.f32.partialorder %v2699_v57, %v2777_v39  ;;  %v1361_v57 = vcvt.f32.s32 %v2719_v56  ;;  %v1527_v59 = vshll.u32 %v1526_v53, 16 }
 0x26c   :  { %v1552_v26 = vsel %vm1551_vm0, %v1547_v9, inf  ;;  %v1537_v2 = vsel %vm1536_vm2, %v1532_v43, inf  ;;  %v1497_v9 = vshll.u32 %v1496_v6, 16  ;;  %v1482_v43 = vshll.u32 %v1481_v10, 16 }
 0x26d   :  { %1553 = vmin.xlane.f32.xlu1 %v1552_v26  ;;  %1538 = vmin.xlane.f32.xlu0 %v1537_v2  ;;  %v1362_v14 = vshll.u32 %v1361_v57, 16  ;;  %v1556_v3 = vcvt.f32.s32 %v2775_v21 }
 0x2da   :  { %v1344_v4 = vpop.xlane.xlu1 %1343 }
 0x2db   :  { %v1345_v35 = vcvt.f32.s32 %v1344_v4 }
 0x2dd   :  { %v1348_v23 = vadd.s32 %v1347_v48, %v1345_v35  ;;  %v1541_v35 = vcvt.f32.s32 %v2777_v39 }
 0x2de   :  { %v1374_v25 = vpop.xlane.xlu1 %1373  ;;  %v1329_v11 = vpop.xlane.xlu0 %1328 }
 0x2df   :  { %1561 = vst.msk [vmem:[%s2866_s3 + $0x8] sm:$0xff] %vm1559_vm1, %v1348_v23  ;;  %v1375_v38 = vcvt.f32.s32 %v1374_v25  ;;  %v1330_v40 = vcvt.f32.s32 %v1329_v11  ;;  %v1542_v21 = vshll.u32 %v1541_v35, 16 }
 0x2e1   :  { %v1378_v18 = vadd.s32 %v1377_v62, %v1375_v38  ;;  %v1333_v20 = vadd.s32 %v1332_v15, %v1330_v40  ;;  %v1557_v38 = vshll.u32 %v1556_v3, 16 }
 0x2e2   :  { %v1359_v36 = vpop.xlane.xlu0 %1358 }
 0x2e3   :  { %1563 = vst.msk [vmem:[%s2866_s3 + $0x18] sm:$0xff] %vm1559_vm1, %v1378_v18  ;;  %1560 = vst.msk [vmem:[%s2866_s3] sm:$0xff] %vm1559_vm1, %v1333_v20  ;;  %v1360_v56 = vcvt.f32.s32 %v1359_v36 }
 0x2e5   :  { %v1363_v51 = vadd.s32 %v1362_v14, %v1360_v56 }
 0x2e6   :  { %v1404_v55 = vpop.xlane.xlu1 %1403  ;;  %v1389_v17 = vpop.xlane.xlu0 %1388 }
 0x2e7   :  { %1562 = vst.msk [vmem:[%s2866_s3 + $0x10] sm:$0xff] %vm1559_vm1, %v1363_v51  ;;  %v1405_v47 = vcvt.f32.s32 %v1404_v55  ;;  %v1390_v5 = vcvt.f32.s32 %v1389_v17 }
 0x2e9   :  { %v1408_v46 = vadd.s32 %v1407_v32, %v1405_v47  ;;  %v1393_v33 = vadd.s32 %v1392_v37, %v1390_v5 }
 0x2ea   :  { %v1434_v29 = vpop.xlane.xlu1 %1433  ;;  %v1419_v49 = vpop.xlane.xlu0 %1418 }
 0x2eb   :  { %1565 = vst.msk [vmem:[%s2866_s3 + $0x28] sm:$0xff] %vm1559_vm1, %v1408_v46  ;;  %1564 = vst.msk [vmem:[%s2866_s3 + $0x20] sm:$0xff] %vm1559_vm1, %v1393_v33  ;;  %v1435_v27 = vcvt.f32.s32 %v1434_v29  ;;  %v1420_v42 = vcvt.f32.s32 %v1419_v49 }
 0x2ed   :  { %v1438_v7 = vadd.s32 %v1437_v12, %v1435_v27  ;;  %v1423_v30 = vadd.s32 %v1422_v22, %v1420_v42 }
 0x2ee   :  { %v1464_v8 = vpop.xlane.xlu1 %1463  ;;  %v1449_v45 = vpop.xlane.xlu0 %1448 }
 0x2ef   :  { %1567 = vst.msk [vmem:[%s2866_s3 + $0x38] sm:$0xff] %vm1559_vm1, %v1438_v7  ;;  %1566 = vst.msk [vmem:[%s2866_s3 + $0x30] sm:$0xff] %vm1559_vm1, %v1423_v30  ;;  %v1465_v34 = vcvt.f32.s32 %v1464_v8  ;;  %v1450_v50 = vcvt.f32.s32 %v1449_v45 }
 0x2f1   :  { %v1468_v0 = vadd.s32 %v1467_v13, %v1465_v34  ;;  %v1453_v31 = vadd.s32 %v1452_v41, %v1450_v50 }
 0x2f2   :  { %v1494_v60 = vpop.xlane.xlu1 %1493  ;;  %v1479_v61 = vpop.xlane.xlu0 %1478 }
 0x2f3   :  { %1569 = vst.msk [vmem:[%s2866_s3 + $0x48] sm:$0xff] %vm1559_vm1, %v1468_v0  ;;  %1568 = vst.msk [vmem:[%s2866_s3 + $0x40] sm:$0xff] %vm1559_vm1, %v1453_v31  ;;  %v1495_v26 = vcvt.f32.s32 %v1494_v60  ;;  %v1480_v2 = vcvt.f32.s32 %v1479_v61 }
 0x2f5   :  { %v1498_v24 = vadd.s32 %v1497_v9, %v1495_v26  ;;  %v1483_v58 = vadd.s32 %v1482_v43, %v1480_v2 }
 0x2f6   :  { %v1524_v4 = vpop.xlane.xlu1 %1523  ;;  %v1509_v48 = vpop.xlane.xlu0 %1508 }
 0x2f7   :  { %1571 = vst.msk [vmem:[%s2866_s3 + $0x58] sm:$0xff] %vm1559_vm1, %v1498_v24  ;;  %1570 = vst.msk [vmem:[%s2866_s3 + $0x50] sm:$0xff] %vm1559_vm1, %v1483_v58  ;;  %v1525_v23 = vcvt.f32.s32 %v1524_v4  ;;  %v1510_v62 = vcvt.f32.s32 %v1509_v48 }
 0x2f9   :  { %v1528_v25 = vadd.s32 %v1527_v59, %v1525_v23  ;;  %v1513_v11 = vadd.s32 %v1512_v63, %v1510_v62 }
 0x2fa   :  { %v1554_v15 = vpop.xlane.xlu1 %1553  ;;  %v1539_v57 = vpop.xlane.xlu0 %1538 }
 0x2fb   :  { %1573 = vst.msk [vmem:[%s2866_s3 + $0x68] sm:$0xff] %vm1559_vm1, %v1528_v25  ;;  %1572 = vst.msk [vmem:[%s2866_s3 + $0x60] sm:$0xff] %vm1559_vm1, %v1513_v11  ;;  %v1555_v39 = vcvt.f32.s32 %v1554_v15  ;;  %v1540_v40 = vcvt.f32.s32 %v1539_v57 }
 0x2fd   :  { %v1558_v18 = vadd.s32 %v1557_v38, %v1555_v39  ;;  %v1543_v20 = vadd.s32 %v1542_v21, %v1540_v40 }
 0x2ff   :  { %1575 = vst.msk [vmem:[%s2866_s3 + $0x78] sm:$0xff] %vm1559_vm1, %v1558_v18  ;;  %1574 = vst.msk [vmem:[%s2866_s3 + $0x70] sm:$0xff] %vm1559_vm1, %v1543_v20 }

</bundles_post_ra>
